<compile_context>
chip_gen: v5e
topology: v5e:2x2
jax: 0.10.0
libtpu: 0.0.40
codegen_flags: <defaults>
</compile_context>

<pallas_src>
import numpy as np
import jax
import jax.numpy as jnp
from jax import lax
from jax.experimental import pallas as pl
from jax.experimental.pallas import tpu as pltpu


def _round_up(v, mult):
    return ((v + mult - 1) // mult) * mult


# ---------------------------------------------------------------------------
# Probe: does `ref[pl.ds(k, 8, stride=0), :]` lower to a replicated load?
# ---------------------------------------------------------------------------
_STRIDE0_CACHE = None


def _stride0_broadcast_supported():
    global _STRIDE0_CACHE
    if _STRIDE0_CACHE is not None:
        return _STRIDE0_CACHE
    ok = False
    try:
        def _probe(x_ref, o_ref):
            o_ref[...] = x_ref[pl.ds(15, 8, stride=0), :]

        x_np = np.arange(16 * 128, dtype=np.float32).reshape(16, 128)
        out = pl.pallas_call(
            _probe, out_shape=jax.ShapeDtypeStruct((8, 128), jnp.float32)
        )(jnp.asarray(x_np))
        out = np.asarray(jax.block_until_ready(out))
        ok = bool(np.allclose(out, np.broadcast_to(x_np[15:16], (8, 128))))
    except Exception:
        ok = False
    _STRIDE0_CACHE = ok
    return ok


# ---------------------------------------------------------------------------
# Pallas kernel: fixed-iteration OSQP/ADMM for a lane-packed tile of QPs.
# ---------------------------------------------------------------------------
def _make_admm_kernel(num_iters, rho, alpha, n_pad, m_pad, bt,
                      accum_chains, use_stride0):
    rho = float(rho)
    alpha = float(alpha)
    inv_rho = 1.0 / rho
    one_m_alpha = 1.0 - alpha
    k_dim = n_pad + m_pad
    KV, NV, MV = k_dim // 8, n_pad // 8, m_pad // 8
    n_acc = max(1, int(accum_chains))   # accumulator chains (VALU latency split)
    num_iters = int(num_iters)
    bt = int(bt)

    def kernel(W_ref, negc_ref, l_ref, u_ref, x_ref, s_ref):
        # W_ref:     (k_dim, KV, 8, BT)  W_ref[k, j//8, j%8, b] = W[k, j] (lane b)
        # negc_ref:  (KV, 8, BT)   = -c
        # l_ref/u_ref: (MV, 8, BT)
        # x_ref (out): (NV, 8, BT)
        # s_ref: VMEM scratch (k_dim, BT) holding the fused state [x ; rho*z - y].
        s_ref[...] = jnp.zeros_like(s_ref)

        def bcast_row(k):
            if use_stride0:
                # One replicated vld: row k copied across all 8 sublanes.
                return s_ref[pl.ds(k, 8, stride=0), :]
            # Fallback: regular (1, BT) load + sublane broadcast op.
            return jnp.broadcast_to(s_ref[pl.ds(k, 1), :], (8, bt))

        def body(_, carry):
            x, z, y = carry
            # Batched affine map  t[j, b] = sum_k s[k, b] * W[k, j, b] - c[j, b],
            # split over n_acc accumulator chains; chain 0 is seeded with -c,
            # the others with their first product (no zero inits).
            accs = [negc_ref[...]] + [None] * (n_acc - 1)
            for k in range(k_dim):
                # (1,8,BT) * (KV,8,BT): the leading-dim broadcast is free vreg reuse.
                term = bcast_row(k)[None, :, :] * W_ref[k]
                j = k % n_acc
                accs[j] = term if accs[j] is None else accs[j] + term
            t = accs[0]
            for a in accs[1:]:
                if a is not None:
                    t = t + a

            xt = t[:NV]                       # (NV, 8, BT)
            zt = t[NV:]                       # (MV, 8, BT)
            x_new = alpha * xt + one_m_alpha * x
            # Store the x rows of the fused state right away: next iteration's
            # first broadcast loads hit rows [0, n_pad).
            s_ref[pl.ds(0, n_pad), :] = x_new.reshape(n_pad, bt)

            z_mix = alpha * zt + one_m_alpha * z
            z_new = jnp.clip(z_mix + y * inv_rho, l_ref[...], u_ref[...])
            y_new = y + rho * (z_mix - z_new)
            s_ref[pl.ds(n_pad, m_pad), :] = (rho * z_new - y_new).reshape(m_pad, bt)
            return x_new, z_new, y_new

        x0 = jnp.zeros((NV, 8, bt), jnp.float32)
        z0 = jnp.zeros((MV, 8, bt), jnp.float32)
        y0 = jnp.zeros((MV, 8, bt), jnp.float32)
        # unroll=1: the body already contains a fully unrolled K-step FMA loop;
        # deeper unrolling only raises vreg pressure.
        x_fin, _, _ = lax.fori_loop(0, num_iters, body, (x0, z0, y0), unroll=1)
        x_ref[...] = x_fin

    return kernel


# ---------------------------------------------------------------------------
# Module-equivalent wrapper (forward pass of the PyTorch OSQP module).
# ---------------------------------------------------------------------------
class OSQPPallas:
    def __init__(self, P_idx, P_shape, A_idx, A_shape,
                 eps_rel=1e-5, eps_abs=1e-5, verbose=False, max_iter=10000,
                 algebra='builtin', solver_type='direct',
                 rho=0.1, sigma=1e-6, alpha=1.6, batch_tile=128, accum_chains=4):
        self.P_idx, self.P_shape = P_idx, P_shape
        self.A_idx, self.A_shape = A_idx, A_shape
        self.eps_rel, self.eps_abs = eps_rel, eps_abs
        self.verbose = verbose
        self.max_iter = int(max_iter)
        self.algebra = algebra
        self.solver_type = solver_type
        self.rho, self.sigma, self.alpha = rho, sigma, alpha
        assert batch_tile % 128 == 0, 'batch_tile must be a multiple of 128'
        self.batch_tile = batch_tile
        self.accum_chains = accum_chains

    def __call__(self, P_val, q_val, A_val, l_val, u_val):
        m, n = self.A_shape
        assert self.P_shape == (n, n)

        params = [jnp.asarray(p, jnp.float32) for p in
                  (P_val, q_val, A_val, l_val, u_val)]
        for p in params:
            assert p.ndim <= 2, 'Unexpected number of dimensions'
        batch_mode = any(p.ndim > 1 for p in params)
        if not batch_mode:
            n_batch = 1
        else:
            n_batch = max(p.shape[0] if p.ndim == 2 else 1 for p in params)
        params = [jnp.broadcast_to(p[None, :], (n_batch, p.shape[0]))
                  if p.ndim == 1 else p for p in params]
        P_val, q_val, A_val, l_val, u_val = params
        assert A_val.shape[1] == len(self.A_idx[0]), 'Unexpected size of A'
        assert P_val.shape[1] == len(self.P_idx[0]), 'Unexpected size of P'

        # --- glue: densify sparse P / A (duplicates summed, like csc_matrix) ---
        pr, pc = np.asarray(self.P_idx[0]), np.asarray(self.P_idx[1])
        ar, ac = np.asarray(self.A_idx[0]), np.asarray(self.A_idx[1])
        P_d = jnp.zeros((n_batch, n, n), jnp.float32).at[:, pr, pc].add(P_val)
        # OSQP treats P via its upper triangle -> symmetrize.
        P_full = jnp.triu(P_d) + jnp.swapaxes(jnp.triu(P_d, 1), 1, 2)
        A_d = jnp.zeros((n_batch, m, n), jnp.float32).at[:, ar, ac].add(A_val)

        # --- glue: one-time "factorization" + fused iteration matrix W, offset c
        hp = lax.Precision.HIGHEST
        AtA = jnp.einsum('bmi,bmj->bij', A_d, A_d, precision=hp)
        Kmat = P_full + self.sigma * jnp.eye(n, dtype=jnp.float32) + self.rho * AtA
        Minv = jnp.linalg.inv(Kmat)                                    # symmetric
        MinvAT = jnp.einsum('bij,bkj->bik', Minv, A_d, precision=hp)   # (B,n,m)
        AMinv = jnp.swapaxes(MinvAT, 1, 2)                             # (B,m,n)
        AMAT = jnp.einsum('bmn,bnk->bmk', A_d, MinvAT, precision=hp)   # (B,m,m)
        qMinv = jnp.einsum('bn,bnk->bk', q_val, Minv, precision=hp)      # (B,n)
        qMinvAT = jnp.einsum('bn,bnm->bm', q_val, MinvAT, precision=hp)  # (B,m)

        # --- pad to TPU-friendly shapes and lane-pack the batch dimension ---
        # Invariant: padded dims carry exact zeros in W/c and l=u=0, which keeps
        # padded rows / padded batch lanes at exactly zero through the iteration.
        n_pad = _round_up(n, 8)
        m_pad = _round_up(m, 8)
        k_dim = n_pad + m_pad
        KV, NV, MV = k_dim // 8, n_pad // 8, m_pad // 8
        bt = self.batch_tile
        b_pad = _round_up(n_batch, bt)       # >= 2 tiles whenever n_batch > bt,
        num_tiles = b_pad // bt              # so v7x megacore can shard them.

        Wb = jnp.zeros((b_pad, k_dim, k_dim), jnp.float32)
        Wb = Wb.at[:n_batch, 0:n, 0:n].set(self.sigma * Minv)
        Wb = Wb.at[:n_batch, 0:n, n_pad:n_pad + m].set(self.sigma * MinvAT)
        Wb = Wb.at[:n_batch, n_pad:n_pad + m, 0:n].set(AMinv)
        Wb = Wb.at[:n_batch, n_pad:n_pad + m, n_pad:n_pad + m].set(AMAT)
        # Lane-dense layout W[k, j//8, j%8, b].
        W_t = jnp.transpose(Wb, (1, 2, 0)).reshape(k_dim, KV, 8, b_pad)

        negc = jnp.zeros((b_pad, k_dim), jnp.float32)
        negc = negc.at[:n_batch, 0:n].set(-qMinv)
        negc = negc.at[:n_batch, n_pad:n_pad + m].set(-qMinvAT)
        negc_t = negc.T.reshape(KV, 8, b_pad)

        lb = jnp.zeros((b_pad, m_pad), jnp.float32).at[:n_batch, :m].set(l_val)
        ub = jnp.zeros((b_pad, m_pad), jnp.float32).at[:n_batch, :m].set(u_val)
        l_t = lb.T.reshape(MV, 8, b_pad)
        u_t = ub.T.reshape(MV, 8, b_pad)

        use_stride0 = _stride0_broadcast_supported()
        kernel = _make_admm_kernel(self.max_iter, self.rho, self.alpha,
                                   n_pad, m_pad, bt, self.accum_chains,
                                   use_stride0)

        # --- VMEM budgeting (v7x has only 64 MiB/TC; leave Mosaic headroom) ---
        vmem_cap = 64 << 20
        try:
            info = pltpu.get_tpu_info()
            vmem_cap = int(getattr(info, "vmem_capacity_bytes", vmem_cap))
        except Exception:
            pass
        w_block = 4 * k_dim * k_dim * bt
        small_blocks = 4 * bt * (k_dim + 2 * m_pad + n_pad)
        # Each grid step reuses its W tile for max_iter ADMM iterations, so
        # double-buffering W only costs VMEM; single-buffer it when large.
        single_buffer_w = 2 * w_block > vmem_cap // 4
        w_bufs = 1 if single_buffer_w else 2
        vmem_needed = w_bufs * w_block + 2 * small_blocks + 4 * k_dim * bt + (2 << 20)
        vmem_limit = None
        if vmem_needed > (16 << 20):
            vmem_limit = int(min(vmem_needed,
                                 max(vmem_cap - (6 << 20), 16 << 20)))

        w_spec_kwargs = {}
        if single_buffer_w:
            try:
                w_spec_kwargs['pipeline_mode'] = pl.Buffered(1)
            except Exception:
                pass
        w_spec = pl.BlockSpec((k_dim, KV, 8, bt), lambda b: (0, 0, 0, b),
                              **w_spec_kwargs)

        flops_iter = 2 * k_dim * k_dim * bt + 10 * (n_pad + 2 * m_pad) * bt
        cost = pl.CostEstimate(
            flops=int(self.max_iter) * int(flops_iter) * int(num_tiles),
            transcendentals=0,
            bytes_accessed=int(4 * (k_dim * k_dim + k_dim + 2 * m_pad + n_pad)
                               * b_pad))

        x4 = pl.pallas_call(
            kernel,
            out_shape=jax.ShapeDtypeStruct((NV, 8, b_pad), jnp.float32),
            grid_spec=pltpu.PrefetchScalarGridSpec(
                num_scalar_prefetch=0,
                grid=(num_tiles,),
                in_specs=[
                    w_spec,                                             # W
                    pl.BlockSpec((KV, 8, bt), lambda b: (0, 0, b)),     # -c
                    pl.BlockSpec((MV, 8, bt), lambda b: (0, 0, b)),     # l
                    pl.BlockSpec((MV, 8, bt), lambda b: (0, 0, b)),     # u
                ],
                out_specs=pl.BlockSpec((NV, 8, bt), lambda b: (0, 0, b)),
                scratch_shapes=[pltpu.VMEM((k_dim, bt), jnp.float32)],
            ),
            compiler_params=pltpu.CompilerParams(
                dimension_semantics=("parallel",),
                vmem_limit_bytes=vmem_limit),
            cost_estimate=cost,
        )(W_t, negc_t, l_t, u_t)

        x = x4.reshape(n_pad, b_pad).T[:n_batch, :n]
        if not batch_mode:
            x = x[0]
        return x


# ---------------------------------------------------------------------------
# Pure-JAX reference of the ORIGINAL (unfused) ADMM iteration (sanity check).
# ---------------------------------------------------------------------------
def _admm_reference(Minv, A, q, l, u, num_iters, rho, sigma, alpha):
    def one(Mi, Ai, qi, li, ui):
        def body(_, carry):
            x, z, y = carry
            rhs = sigma * x - qi + (rho * z - y) @ Ai
            xt = rhs @ Mi
            zt = xt @ Ai.T
            xn = alpha * xt + (1.0 - alpha) * x
            zmix = alpha * zt + (1.0 - alpha) * z
            zn = jnp.clip(zmix + y / rho, li, ui)
            yn = y + rho * (zmix - zn)
            return xn, zn, yn
        x0 = jnp.zeros_like(qi)
        z0 = jnp.zeros_like(li)
        y0 = jnp.zeros_like(li)
        xf, _, _ = lax.fori_loop(0, num_iters, body, (x0, z0, y0))
        return xf
    return jax.vmap(one)(Minv, A, q, l, u)


if __name__ == "__main__":
    n, m, B = 16, 32, 2
    num_iters = 1000

    key = jax.random.PRNGKey(0)
    k1, k2, k3, k4, k5 = jax.random.split(key, 5)

    # PSD objective matrices, supplied (as in OSQP usage) via upper-tri entries.
    L = jax.random.normal(k1, (B, n, n), jnp.float32) * 0.3
    P_dense = jnp.einsum('bik,bjk->bij', L, L) + 0.5 * jnp.eye(n, dtype=jnp.float32)
    iu = np.triu_indices(n)
    P_idx = (iu[0], iu[1])
    P_val = P_dense[:, iu[0], iu[1]]                      # (B, nnz_P)

    # Dense constraint matrix supplied via its full COO pattern.
    A_dense = jax.random.normal(k2, (B, m, n), jnp.float32)
    ar, ac = np.nonzero(np.ones((m, n), dtype=bool))
    A_idx = (ar, ac)
    A_val = A_dense[:, ar, ac]                            # (B, nnz_A)

    q_val = jax.random.normal(k3, (B, n), jnp.float32)
    x_feas = jax.random.normal(k4, (B, n), jnp.float32)
    slack = jnp.abs(jax.random.normal(k5, (B, m), jnp.float32)) + 0.5
    Ax = jnp.einsum('bmn,bn->bm', A_dense, x_feas)
    l_val = Ax - slack
    u_val = Ax + slack

    layer = OSQPPallas(P_idx, (n, n), A_idx, (m, n), max_iter=num_iters)
    x = layer(P_val, q_val, A_val, l_val, u_val)
    x = jax.block_until_ready(x)
    assert x.shape == (B, n)

    # Sanity check against the same ADMM iteration (unfused form) in plain JAX.
    rho, sigma, alpha = layer.rho, layer.sigma, layer.alpha
    P_full = jnp.triu(P_dense) + jnp.swapaxes(jnp.triu(P_dense, 1), 1, 2)
    Kmat = P_full + sigma * jnp.eye(n, dtype=jnp.float32) \
        + rho * jnp.einsum('bmi,bmj->bij', A_dense, A_dense)
    Minv = jnp.linalg.inv(Kmat)
    x_ref = _admm_reference(Minv, A_dense, q_val, l_val, u_val,
                            num_iters, rho, sigma, alpha)
    err = float(jnp.max(jnp.abs(x - x_ref)))
    assert err < 2e-2, f"mismatch vs reference ADMM: {err}"

    print("KERNEL_OK")
</pallas_src>

<mosaic_0001>
module attributes {stable_mosaic.version = 11 : i64} {
  func.func @_probe(%arg0: memref<16x128xf32, #tpu.memory_space<vmem>>, %arg1: memref<8x128xf32, #tpu.memory_space<vmem>>) attributes {dimension_semantics = [], scalar_prefetch = 0 : i64, scratch_operands = 0 : i64, tpu.core_type = #tpu.core_type<tc>} {
    %c15 = arith.constant 15 : index
    %c0 = arith.constant 0 : index
    %0 = tpu.strided_load %arg0[%c15, %c0] {strides = array<i32: 0, 1>} : memref<16x128xf32, #tpu.memory_space<vmem>>, vector<8x128xf32>
    %c0_0 = arith.constant 0 : index
    %c0_1 = arith.constant 0 : index
    %1 = vector.load %arg1[%c0_0, %c0_1] : memref<8x128xf32, #tpu.memory_space<vmem>>, vector<8x128xf32>
    tpu.vector_store %arg1[%c0_0, %c0_1], %0 {strides = array<i32>} : memref<8x128xf32, #tpu.memory_space<vmem>>, vector<8x128xf32>,
    return
  }
}

module attributes {stable_mosaic.version = 11 : i64} {
  func.func @kernel(%arg0: i32, %arg1: memref<48x6x8x128xf32, #tpu.memory_space<vmem>>, %arg2: memref<6x8x128xf32, #tpu.memory_space<vmem>>, %arg3: memref<4x8x128xf32, #tpu.memory_space<vmem>>, %arg4: memref<4x8x128xf32, #tpu.memory_space<vmem>>, %arg5: memref<2x8x128xf32, #tpu.memory_space<vmem>>, %arg6: memref<48x128xf32, #tpu.memory_space<vmem>>) attributes {dimension_semantics = [#tpu.dimension_semantics<parallel>], iteration_bounds = array<i64: 1>, scalar_prefetch = 0 : i64, scratch_operands = 1 : i64, tpu.core_type = #tpu.core_type<tc>, window_params = [{transform_indices = @transform_0, window_bounds = array<i64: 48, 6, 8, 128>}, {transform_indices = @transform_1, window_bounds = array<i64: 6, 8, 128>}, {transform_indices = @transform_2, window_bounds = array<i64: 4, 8, 128>}, {transform_indices = @transform_3, window_bounds = array<i64: 4, 8, 128>}, {transform_indices = @transform_4, window_bounds = array<i64: 2, 8, 128>}]} {
    %cst = arith.constant 0.000000e+00 : f32
    %0 = vector.broadcast %cst : f32 to vector<48x128xf32>
    %c0 = arith.constant 0 : index
    %c0_0 = arith.constant 0 : index
    %1 = vector.load %arg6[%c0, %c0_0] : memref<48x128xf32, #tpu.memory_space<vmem>>, vector<48x128xf32>
    tpu.vector_store %arg6[%c0, %c0_0], %0 {strides = array<i32>} : memref<48x128xf32, #tpu.memory_space<vmem>>, vector<48x128xf32>,
    %cst_1 = arith.constant 0.000000e+00 : f32
    %2 = vector.broadcast %cst_1 : f32 to vector<2x8x128xf32>
    %cst_2 = arith.constant 0.000000e+00 : f32
    %3 = vector.broadcast %cst_2 : f32 to vector<4x8x128xf32>
    %cst_3 = arith.constant 0.000000e+00 : f32
    %4 = vector.broadcast %cst_3 : f32 to vector<4x8x128xf32>
    %c0_i32 = arith.constant 0 : i32
    %c1000_i32 = arith.constant 1000 : i32
    %5 = arith.addi %c0_i32, %c1000_i32 : i32
    %c1_i32 = arith.constant 1 : i32
    %6:3 = scf.for %arg7 = %c0_i32 to %5 step %c1_i32 iter_args(%arg8 = %2, %arg9 = %3, %arg10 = %4) -> (vector<2x8x128xf32>, vector<4x8x128xf32>, vector<4x8x128xf32>)  : i32 {
      %c0_7 = arith.constant 0 : index
      %c0_8 = arith.constant 0 : index
      %c0_9 = arith.constant 0 : index
      %8 = vector.load %arg2[%c0_7, %c0_8, %c0_9] : memref<6x8x128xf32, #tpu.memory_space<vmem>>, vector<6x8x128xf32>
      %c0_10 = arith.constant 0 : index
      %c0_11 = arith.constant 0 : index
      %9 = vector.load %arg6[%c0_10, %c0_11] : memref<48x128xf32, #tpu.memory_space<vmem>>, vector<1x128xf32>
      %10 = vector.shape_cast %9 : vector<1x128xf32> to vector<1x128xf32>
      %11 = vector.broadcast %10 : vector<1x128xf32> to vector<8x128xf32>
      %12 = vector.shape_cast %11 : vector<8x128xf32> to vector<1x8x128xf32>
      %c0_12 = arith.constant 0 : index
      %c0_13 = arith.constant 0 : index
      %c0_14 = arith.constant 0 : index
      %c0_15 = arith.constant 0 : index
      %13 = vector.load %arg1[%c0_12, %c0_13, %c0_14, %c0_15] : memref<48x6x8x128xf32, #tpu.memory_space<vmem>>, vector<1x6x8x128xf32>
      %14 = vector.shape_cast %13 : vector<1x6x8x128xf32> to vector<6x8x128xf32>
      %15 = vector.broadcast %12 : vector<1x8x128xf32> to vector<6x8x128xf32>
      %16 = arith.mulf %15, %14 : vector<6x8x128xf32>
      %17 = arith.addf %8, %16 : vector<6x8x128xf32>
      %c1 = arith.constant 1 : index
      %c0_16 = arith.constant 0 : index
      %18 = vector.load %arg6[%c1, %c0_16] : memref<48x128xf32, #tpu.memory_space<vmem>>, vector<1x128xf32>
      %19 = vector.shape_cast %18 : vector<1x128xf32> to vector<1x128xf32>
      %20 = vector.broadcast %19 : vector<1x128xf32> to vector<8x128xf32>
      %21 = vector.shape_cast %20 : vector<8x128xf32> to vector<1x8x128xf32>
      %c1_17 = arith.constant 1 : index
      %c0_18 = arith.constant 0 : index
      %c0_19 = arith.constant 0 : index
      %c0_20 = arith.constant 0 : index
      %22 = vector.load %arg1[%c1_17, %c0_18, %c0_19, %c0_20] : memref<48x6x8x128xf32, #tpu.memory_space<vmem>>, vector<1x6x8x128xf32>
      %23 = vector.shape_cast %22 : vector<1x6x8x128xf32> to vector<6x8x128xf32>
      %24 = vector.broadcast %21 : vector<1x8x128xf32> to vector<6x8x128xf32>
      %25 = arith.mulf %24, %23 : vector<6x8x128xf32>
      %c2 = arith.constant 2 : index
      %c0_21 = arith.constant 0 : index
      %26 = vector.load %arg6[%c2, %c0_21] : memref<48x128xf32, #tpu.memory_space<vmem>>, vector<1x128xf32>
      %27 = vector.shape_cast %26 : vector<1x128xf32> to vector<1x128xf32>
      %28 = vector.broadcast %27 : vector<1x128xf32> to vector<8x128xf32>
      %29 = vector.shape_cast %28 : vector<8x128xf32> to vector<1x8x128xf32>
      %c2_22 = arith.constant 2 : index
      %c0_23 = arith.constant 0 : index
      %c0_24 = arith.constant 0 : index
      %c0_25 = arith.constant 0 : index
      %30 = vector.load %arg1[%c2_22, %c0_23, %c0_24, %c0_25] : memref<48x6x8x128xf32, #tpu.memory_space<vmem>>, vector<1x6x8x128xf32>
      %31 = vector.shape_cast %30 : vector<1x6x8x128xf32> to vector<6x8x128xf32>
      %32 = vector.broadcast %29 : vector<1x8x128xf32> to vector<6x8x128xf32>
      %33 = arith.mulf %32, %31 : vector<6x8x128xf32>
      %c3 = arith.constant 3 : index
      %c0_26 = arith.constant 0 : index
      %34 = vector.load %arg6[%c3, %c0_26] : memref<48x128xf32, #tpu.memory_space<vmem>>, vector<1x128xf32>
      %35 = vector.shape_cast %34 : vector<1x128xf32> to vector<1x128xf32>
      %36 = vector.broadcast %35 : vector<1x128xf32> to vector<8x128xf32>
      %37 = vector.shape_cast %36 : vector<8x128xf32> to vector<1x8x128xf32>
      %c3_27 = arith.constant 3 : index
      %c0_28 = arith.constant 0 : index
      %c0_29 = arith.constant 0 : index
      %c0_30 = arith.constant 0 : index
      %38 = vector.load %arg1[%c3_27, %c0_28, %c0_29, %c0_30] : memref<48x6x8x128xf32, #tpu.memory_space<vmem>>, vector<1x6x8x128xf32>
      %39 = vector.shape_cast %38 : vector<1x6x8x128xf32> to vector<6x8x128xf32>
      %40 = vector.broadcast %37 : vector<1x8x128xf32> to vector<6x8x128xf32>
      %41 = arith.mulf %40, %39 : vector<6x8x128xf32>
      %c4 = arith.constant 4 : index
      %c0_31 = arith.constant 0 : index
      %42 = vector.load %arg6[%c4, %c0_31] : memref<48x128xf32, #tpu.memory_space<vmem>>, vector<1x128xf32>
      %43 = vector.shape_cast %42 : vector<1x128xf32> to vector<1x128xf32>
      %44 = vector.broadcast %43 : vector<1x128xf32> to vector<8x128xf32>
      %45 = vector.shape_cast %44 : vector<8x128xf32> to vector<1x8x128xf32>
      %c4_32 = arith.constant 4 : index
      %c0_33 = arith.constant 0 : index
      %c0_34 = arith.constant 0 : index
      %c0_35 = arith.constant 0 : index
      %46 = vector.load %arg1[%c4_32, %c0_33, %c0_34, %c0_35] : memref<48x6x8x128xf32, #tpu.memory_space<vmem>>, vector<1x6x8x128xf32>
      %47 = vector.shape_cast %46 : vector<1x6x8x128xf32> to vector<6x8x128xf32>
      %48 = vector.broadcast %45 : vector<1x8x128xf32> to vector<6x8x128xf32>
      %49 = arith.mulf %48, %47 : vector<6x8x128xf32>
      %50 = arith.addf %17, %49 : vector<6x8x128xf32>
      %c5 = arith.constant 5 : index
      %c0_36 = arith.constant 0 : index
      %51 = vector.load %arg6[%c5, %c0_36] : memref<48x128xf32, #tpu.memory_space<vmem>>, vector<1x128xf32>
      %52 = vector.shape_cast %51 : vector<1x128xf32> to vector<1x128xf32>
      %53 = vector.broadcast %52 : vector<1x128xf32> to vector<8x128xf32>
      %54 = vector.shape_cast %53 : vector<8x128xf32> to vector<1x8x128xf32>
      %c5_37 = arith.constant 5 : index
      %c0_38 = arith.constant 0 : index
      %c0_39 = arith.constant 0 : index
      %c0_40 = arith.constant 0 : index
      %55 = vector.load %arg1[%c5_37, %c0_38, %c0_39, %c0_40] : memref<48x6x8x128xf32, #tpu.memory_space<vmem>>, vector<1x6x8x128xf32>
      %56 = vector.shape_cast %55 : vector<1x6x8x128xf32> to vector<6x8x128xf32>
      %57 = vector.broadcast %54 : vector<1x8x128xf32> to vector<6x8x128xf32>
      %58 = arith.mulf %57, %56 : vector<6x8x128xf32>
      %59 = arith.addf %25, %58 : vector<6x8x128xf32>
      %c6 = arith.constant 6 : index
      %c0_41 = arith.constant 0 : index
      %60 = vector.load %arg6[%c6, %c0_41] : memref<48x128xf32, #tpu.memory_space<vmem>>, vector<1x128xf32>
      %61 = vector.shape_cast %60 : vector<1x128xf32> to vector<1x128xf32>
      %62 = vector.broadcast %61 : vector<1x128xf32> to vector<8x128xf32>
      %63 = vector.shape_cast %62 : vector<8x128xf32> to vector<1x8x128xf32>
      %c6_42 = arith.constant 6 : index
      %c0_43 = arith.constant 0 : index
      %c0_44 = arith.constant 0 : index
      %c0_45 = arith.constant 0 : index
      %64 = vector.load %arg1[%c6_42, %c0_43, %c0_44, %c0_45] : memref<48x6x8x128xf32, #tpu.memory_space<vmem>>, vector<1x6x8x128xf32>
      %65 = vector.shape_cast %64 : vector<1x6x8x128xf32> to vector<6x8x128xf32>
      %66 = vector.broadcast %63 : vector<1x8x128xf32> to vector<6x8x128xf32>
      %67 = arith.mulf %66, %65 : vector<6x8x128xf32>
      %68 = arith.addf %33, %67 : vector<6x8x128xf32>
      %c7 = arith.constant 7 : index
      %c0_46 = arith.constant 0 : index
      %69 = vector.load %arg6[%c7, %c0_46] : memref<48x128xf32, #tpu.memory_space<vmem>>, vector<1x128xf32>
      %70 = vector.shape_cast %69 : vector<1x128xf32> to vector<1x128xf32>
      %71 = vector.broadcast %70 : vector<1x128xf32> to vector<8x128xf32>
      %72 = vector.shape_cast %71 : vector<8x128xf32> to vector<1x8x128xf32>
      %c7_47 = arith.constant 7 : index
      %c0_48 = arith.constant 0 : index
      %c0_49 = arith.constant 0 : index
      %c0_50 = arith.constant 0 : index
      %73 = vector.load %arg1[%c7_47, %c0_48, %c0_49, %c0_50] : memref<48x6x8x128xf32, #tpu.memory_space<vmem>>, vector<1x6x8x128xf32>
      %74 = vector.shape_cast %73 : vector<1x6x8x128xf32> to vector<6x8x128xf32>
      %75 = vector.broadcast %72 : vector<1x8x128xf32> to vector<6x8x128xf32>
      %76 = arith.mulf %75, %74 : vector<6x8x128xf32>
      %77 = arith.addf %41, %76 : vector<6x8x128xf32>
      %c8 = arith.constant 8 : index
      %c0_51 = arith.constant 0 : index
      %78 = vector.load %arg6[%c8, %c0_51] : memref<48x128xf32, #tpu.memory_space<vmem>>, vector<1x128xf32>
      %79 = vector.shape_cast %78 : vector<1x128xf32> to vector<1x128xf32>
      %80 = vector.broadcast %79 : vector<1x128xf32> to vector<8x128xf32>
      %81 = vector.shape_cast %80 : vector<8x128xf32> to vector<1x8x128xf32>
      %c8_52 = arith.constant 8 : index
      %c0_53 = arith.constant 0 : index
      %c0_54 = arith.constant 0 : index
      %c0_55 = arith.constant 0 : index
      %82 = vector.load %arg1[%c8_52, %c0_53, %c0_54, %c0_55] : memref<48x6x8x128xf32, #tpu.memory_space<vmem>>, vector<1x6x8x128xf32>
      %83 = vector.shape_cast %82 : vector<1x6x8x128xf32> to vector<6x8x128xf32>
      %84 = vector.broadcast %81 : vector<1x8x128xf32> to vector<6x8x128xf32>
      %85 = arith.mulf %84, %83 : vector<6x8x128xf32>
      %86 = arith.addf %50, %85 : vector<6x8x128xf32>
      %c9 = arith.constant 9 : index
      %c0_56 = arith.constant 0 : index
      %87 = vector.load %arg6[%c9, %c0_56] : memref<48x128xf32, #tpu.memory_space<vmem>>, vector<1x128xf32>
      %88 = vector.shape_cast %87 : vector<1x128xf32> to vector<1x128xf32>
      %89 = vector.broadcast %88 : vector<1x128xf32> to vector<8x128xf32>
      %90 = vector.shape_cast %89 : vector<8x128xf32> to vector<1x8x128xf32>
      %c9_57 = arith.constant 9 : index
      %c0_58 = arith.constant 0 : index
      %c0_59 = arith.constant 0 : index
      %c0_60 = arith.constant 0 : index
      %91 = vector.load %arg1[%c9_57, %c0_58, %c0_59, %c0_60] : memref<48x6x8x128xf32, #tpu.memory_space<vmem>>, vector<1x6x8x128xf32>
      %92 = vector.shape_cast %91 : vector<1x6x8x128xf32> to vector<6x8x128xf32>
      %93 = vector.broadcast %90 : vector<1x8x128xf32> to vector<6x8x128xf32>
      %94 = arith.mulf %93, %92 : vector<6x8x128xf32>
      %95 = arith.addf %59, %94 : vector<6x8x128xf32>
      %c10 = arith.constant 10 : index
      %c0_61 = arith.constant 0 : index
      %96 = vector.load %arg6[%c10, %c0_61] : memref<48x128xf32, #tpu.memory_space<vmem>>, vector<1x128xf32>
      %97 = vector.shape_cast %96 : vector<1x128xf32> to vector<1x128xf32>
      %98 = vector.broadcast %97 : vector<1x128xf32> to vector<8x128xf32>
      %99 = vector.shape_cast %98 : vector<8x128xf32> to vector<1x8x128xf32>
      %c10_62 = arith.constant 10 : index
      %c0_63 = arith.constant 0 : index
      %c0_64 = arith.constant 0 : index
      %c0_65 = arith.constant 0 : index
      %100 = vector.load %arg1[%c10_62, %c0_63, %c0_64, %c0_65] : memref<48x6x8x128xf32, #tpu.memory_space<vmem>>, vector<1x6x8x128xf32>
      %101 = vector.shape_cast %100 : vector<1x6x8x128xf32> to vector<6x8x128xf32>
      %102 = vector.broadcast %99 : vector<1x8x128xf32> to vector<6x8x128xf32>
      %103 = arith.mulf %102, %101 : vector<6x8x128xf32>
      %104 = arith.addf %68, %103 : vector<6x8x128xf32>
      %c11 = arith.constant 11 : index
      %c0_66 = arith.constant 0 : index
      %105 = vector.load %arg6[%c11, %c0_66] : memref<48x128xf32, #tpu.memory_space<vmem>>, vector<1x128xf32>
      %106 = vector.shape_cast %105 : vector<1x128xf32> to vector<1x128xf32>
      %107 = vector.broadcast %106 : vector<1x128xf32> to vector<8x128xf32>
      %108 = vector.shape_cast %107 : vector<8x128xf32> to vector<1x8x128xf32>
      %c11_67 = arith.constant 11 : index
      %c0_68 = arith.constant 0 : index
      %c0_69 = arith.constant 0 : index
      %c0_70 = arith.constant 0 : index
      %109 = vector.load %arg1[%c11_67, %c0_68, %c0_69, %c0_70] : memref<48x6x8x128xf32, #tpu.memory_space<vmem>>, vector<1x6x8x128xf32>
      %110 = vector.shape_cast %109 : vector<1x6x8x128xf32> to vector<6x8x128xf32>
      %111 = vector.broadcast %108 : vector<1x8x128xf32> to vector<6x8x128xf32>
      %112 = arith.mulf %111, %110 : vector<6x8x128xf32>
      %113 = arith.addf %77, %112 : vector<6x8x128xf32>
      %c12 = arith.constant 12 : index
      %c0_71 = arith.constant 0 : index
      %114 = vector.load %arg6[%c12, %c0_71] : memref<48x128xf32, #tpu.memory_space<vmem>>, vector<1x128xf32>
      %115 = vector.shape_cast %114 : vector<1x128xf32> to vector<1x128xf32>
      %116 = vector.broadcast %115 : vector<1x128xf32> to vector<8x128xf32>
      %117 = vector.shape_cast %116 : vector<8x128xf32> to vector<1x8x128xf32>
      %c12_72 = arith.constant 12 : index
      %c0_73 = arith.constant 0 : index
      %c0_74 = arith.constant 0 : index
      %c0_75 = arith.constant 0 : index
      %118 = vector.load %arg1[%c12_72, %c0_73, %c0_74, %c0_75] : memref<48x6x8x128xf32, #tpu.memory_space<vmem>>, vector<1x6x8x128xf32>
      %119 = vector.shape_cast %118 : vector<1x6x8x128xf32> to vector<6x8x128xf32>
      %120 = vector.broadcast %117 : vector<1x8x128xf32> to vector<6x8x128xf32>
      %121 = arith.mulf %120, %119 : vector<6x8x128xf32>
      %122 = arith.addf %86, %121 : vector<6x8x128xf32>
      %c13 = arith.constant 13 : index
      %c0_76 = arith.constant 0 : index
      %123 = vector.load %arg6[%c13, %c0_76] : memref<48x128xf32, #tpu.memory_space<vmem>>, vector<1x128xf32>
      %124 = vector.shape_cast %123 : vector<1x128xf32> to vector<1x128xf32>
      %125 = vector.broadcast %124 : vector<1x128xf32> to vector<8x128xf32>
      %126 = vector.shape_cast %125 : vector<8x128xf32> to vector<1x8x128xf32>
      %c13_77 = arith.constant 13 : index
      %c0_78 = arith.constant 0 : index
      %c0_79 = arith.constant 0 : index
      %c0_80 = arith.constant 0 : index
      %127 = vector.load %arg1[%c13_77, %c0_78, %c0_79, %c0_80] : memref<48x6x8x128xf32, #tpu.memory_space<vmem>>, vector<1x6x8x128xf32>
      %128 = vector.shape_cast %127 : vector<1x6x8x128xf32> to vector<6x8x128xf32>
      %129 = vector.broadcast %126 : vector<1x8x128xf32> to vector<6x8x128xf32>
      %130 = arith.mulf %129, %128 : vector<6x8x128xf32>
      %131 = arith.addf %95, %130 : vector<6x8x128xf32>
      %c14 = arith.constant 14 : index
      %c0_81 = arith.constant 0 : index
      %132 = vector.load %arg6[%c14, %c0_81] : memref<48x128xf32, #tpu.memory_space<vmem>>, vector<1x128xf32>
      %133 = vector.shape_cast %132 : vector<1x128xf32> to vector<1x128xf32>
      %134 = vector.broadcast %133 : vector<1x128xf32> to vector<8x128xf32>
      %135 = vector.shape_cast %134 : vector<8x128xf32> to vector<1x8x128xf32>
      %c14_82 = arith.constant 14 : index
      %c0_83 = arith.constant 0 : index
      %c0_84 = arith.constant 0 : index
      %c0_85 = arith.constant 0 : index
      %136 = vector.load %arg1[%c14_82, %c0_83, %c0_84, %c0_85] : memref<48x6x8x128xf32, #tpu.memory_space<vmem>>, vector<1x6x8x128xf32>
      %137 = vector.shape_cast %136 : vector<1x6x8x128xf32> to vector<6x8x128xf32>
      %138 = vector.broadcast %135 : vector<1x8x128xf32> to vector<6x8x128xf32>
      %139 = arith.mulf %138, %137 : vector<6x8x128xf32>
      %140 = arith.addf %104, %139 : vector<6x8x128xf32>
      %c15 = arith.constant 15 : index
      %c0_86 = arith.constant 0 : index
      %141 = vector.load %arg6[%c15, %c0_86] : memref<48x128xf32, #tpu.memory_space<vmem>>, vector<1x128xf32>
      %142 = vector.shape_cast %141 : vector<1x128xf32> to vector<1x128xf32>
      %143 = vector.broadcast %142 : vector<1x128xf32> to vector<8x128xf32>
      %144 = vector.shape_cast %143 : vector<8x128xf32> to vector<1x8x128xf32>
      %c15_87 = arith.constant 15 : index
      %c0_88 = arith.constant 0 : index
      %c0_89 = arith.constant 0 : index
      %c0_90 = arith.constant 0 : index
      %145 = vector.load %arg1[%c15_87, %c0_88, %c0_89, %c0_90] : memref<48x6x8x128xf32, #tpu.memory_space<vmem>>, vector<1x6x8x128xf32>
      %146 = vector.shape_cast %145 : vector<1x6x8x128xf32> to vector<6x8x128xf32>
      %147 = vector.broadcast %144 : vector<1x8x128xf32> to vector<6x8x128xf32>
      %148 = arith.mulf %147, %146 : vector<6x8x128xf32>
      %149 = arith.addf %113, %148 : vector<6x8x128xf32>
      %c16 = arith.constant 16 : index
      %c0_91 = arith.constant 0 : index
      %150 = vector.load %arg6[%c16, %c0_91] : memref<48x128xf32, #tpu.memory_space<vmem>>, vector<1x128xf32>
      %151 = vector.shape_cast %150 : vector<1x128xf32> to vector<1x128xf32>
      %152 = vector.broadcast %151 : vector<1x128xf32> to vector<8x128xf32>
      %153 = vector.shape_cast %152 : vector<8x128xf32> to vector<1x8x128xf32>
      %c16_92 = arith.constant 16 : index
      %c0_93 = arith.constant 0 : index
      %c0_94 = arith.constant 0 : index
      %c0_95 = arith.constant 0 : index
      %154 = vector.load %arg1[%c16_92, %c0_93, %c0_94, %c0_95] : memref<48x6x8x128xf32, #tpu.memory_space<vmem>>, vector<1x6x8x128xf32>
      %155 = vector.shape_cast %154 : vector<1x6x8x128xf32> to vector<6x8x128xf32>
      %156 = vector.broadcast %153 : vector<1x8x128xf32> to vector<6x8x128xf32>
      %157 = arith.mulf %156, %155 : vector<6x8x128xf32>
      %158 = arith.addf %122, %157 : vector<6x8x128xf32>
      %c17 = arith.constant 17 : index
      %c0_96 = arith.constant 0 : index
      %159 = vector.load %arg6[%c17, %c0_96] : memref<48x128xf32, #tpu.memory_space<vmem>>, vector<1x128xf32>
      %160 = vector.shape_cast %159 : vector<1x128xf32> to vector<1x128xf32>
      %161 = vector.broadcast %160 : vector<1x128xf32> to vector<8x128xf32>
      %162 = vector.shape_cast %161 : vector<8x128xf32> to vector<1x8x128xf32>
      %c17_97 = arith.constant 17 : index
      %c0_98 = arith.constant 0 : index
      %c0_99 = arith.constant 0 : index
      %c0_100 = arith.constant 0 : index
      %163 = vector.load %arg1[%c17_97, %c0_98, %c0_99, %c0_100] : memref<48x6x8x128xf32, #tpu.memory_space<vmem>>, vector<1x6x8x128xf32>
      %164 = vector.shape_cast %163 : vector<1x6x8x128xf32> to vector<6x8x128xf32>
      %165 = vector.broadcast %162 : vector<1x8x128xf32> to vector<6x8x128xf32>
      %166 = arith.mulf %165, %164 : vector<6x8x128xf32>
      %167 = arith.addf %131, %166 : vector<6x8x128xf32>
      %c18 = arith.constant 18 : index
      %c0_101 = arith.constant 0 : index
      %168 = vector.load %arg6[%c18, %c0_101] : memref<48x128xf32, #tpu.memory_space<vmem>>, vector<1x128xf32>
      %169 = vector.shape_cast %168 : vector<1x128xf32> to vector<1x128xf32>
      %170 = vector.broadcast %169 : vector<1x128xf32> to vector<8x128xf32>
      %171 = vector.shape_cast %170 : vector<8x128xf32> to vector<1x8x128xf32>
      %c18_102 = arith.constant 18 : index
      %c0_103 = arith.constant 0 : index
      %c0_104 = arith.constant 0 : index
      %c0_105 = arith.constant 0 : index
      %172 = vector.load %arg1[%c18_102, %c0_103, %c0_104, %c0_105] : memref<48x6x8x128xf32, #tpu.memory_space<vmem>>, vector<1x6x8x128xf32>
      %173 = vector.shape_cast %172 : vector<1x6x8x128xf32> to vector<6x8x128xf32>
      %174 = vector.broadcast %171 : vector<1x8x128xf32> to vector<6x8x128xf32>
      %175 = arith.mulf %174, %173 : vector<6x8x128xf32>
      %176 = arith.addf %140, %175 : vector<6x8x128xf32>
      %c19 = arith.constant 19 : index
      %c0_106 = arith.constant 0 : index
      %177 = vector.load %arg6[%c19, %c0_106] : memref<48x128xf32, #tpu.memory_space<vmem>>, vector<1x128xf32>
      %178 = vector.shape_cast %177 : vector<1x128xf32> to vector<1x128xf32>
      %179 = vector.broadcast %178 : vector<1x128xf32> to vector<8x128xf32>
      %180 = vector.shape_cast %179 : vector<8x128xf32> to vector<1x8x128xf32>
      %c19_107 = arith.constant 19 : index
      %c0_108 = arith.constant 0 : index
      %c0_109 = arith.constant 0 : index
      %c0_110 = arith.constant 0 : index
      %181 = vector.load %arg1[%c19_107, %c0_108, %c0_109, %c0_110] : memref<48x6x8x128xf32, #tpu.memory_space<vmem>>, vector<1x6x8x128xf32>
      %182 = vector.shape_cast %181 : vector<1x6x8x128xf32> to vector<6x8x128xf32>
      %183 = vector.broadcast %180 : vector<1x8x128xf32> to vector<6x8x128xf32>
      %184 = arith.mulf %183, %182 : vector<6x8x128xf32>
      %185 = arith.addf %149, %184 : vector<6x8x128xf32>
      %c20 = arith.constant 20 : index
      %c0_111 = arith.constant 0 : index
      %186 = vector.load %arg6[%c20, %c0_111] : memref<48x128xf32, #tpu.memory_space<vmem>>, vector<1x128xf32>
      %187 = vector.shape_cast %186 : vector<1x128xf32> to vector<1x128xf32>
      %188 = vector.broadcast %187 : vector<1x128xf32> to vector<8x128xf32>
      %189 = vector.shape_cast %188 : vector<8x128xf32> to vector<1x8x128xf32>
      %c20_112 = arith.constant 20 : index
      %c0_113 = arith.constant 0 : index
      %c0_114 = arith.constant 0 : index
      %c0_115 = arith.constant 0 : index
      %190 = vector.load %arg1[%c20_112, %c0_113, %c0_114, %c0_115] : memref<48x6x8x128xf32, #tpu.memory_space<vmem>>, vector<1x6x8x128xf32>
      %191 = vector.shape_cast %190 : vector<1x6x8x128xf32> to vector<6x8x128xf32>
      %192 = vector.broadcast %189 : vector<1x8x128xf32> to vector<6x8x128xf32>
      %193 = arith.mulf %192, %191 : vector<6x8x128xf32>
      %194 = arith.addf %158, %193 : vector<6x8x128xf32>
      %c21 = arith.constant 21 : index
      %c0_116 = arith.constant 0 : index
      %195 = vector.load %arg6[%c21, %c0_116] : memref<48x128xf32, #tpu.memory_space<vmem>>, vector<1x128xf32>
      %196 = vector.shape_cast %195 : vector<1x128xf32> to vector<1x128xf32>
      %197 = vector.broadcast %196 : vector<1x128xf32> to vector<8x128xf32>
      %198 = vector.shape_cast %197 : vector<8x128xf32> to vector<1x8x128xf32>
      %c21_117 = arith.constant 21 : index
      %c0_118 = arith.constant 0 : index
      %c0_119 = arith.constant 0 : index
      %c0_120 = arith.constant 0 : index
      %199 = vector.load %arg1[%c21_117, %c0_118, %c0_119, %c0_120] : memref<48x6x8x128xf32, #tpu.memory_space<vmem>>, vector<1x6x8x128xf32>
      %200 = vector.shape_cast %199 : vector<1x6x8x128xf32> to vector<6x8x128xf32>
      %201 = vector.broadcast %198 : vector<1x8x128xf32> to vector<6x8x128xf32>
      %202 = arith.mulf %201, %200 : vector<6x8x128xf32>
      %203 = arith.addf %167, %202 : vector<6x8x128xf32>
      %c22 = arith.constant 22 : index
      %c0_121 = arith.constant 0 : index
      %204 = vector.load %arg6[%c22, %c0_121] : memref<48x128xf32, #tpu.memory_space<vmem>>, vector<1x128xf32>
      %205 = vector.shape_cast %204 : vector<1x128xf32> to vector<1x128xf32>
      %206 = vector.broadcast %205 : vector<1x128xf32> to vector<8x128xf32>
      %207 = vector.shape_cast %206 : vector<8x128xf32> to vector<1x8x128xf32>
      %c22_122 = arith.constant 22 : index
      %c0_123 = arith.constant 0 : index
      %c0_124 = arith.constant 0 : index
      %c0_125 = arith.constant 0 : index
      %208 = vector.load %arg1[%c22_122, %c0_123, %c0_124, %c0_125] : memref<48x6x8x128xf32, #tpu.memory_space<vmem>>, vector<1x6x8x128xf32>
      %209 = vector.shape_cast %208 : vector<1x6x8x128xf32> to vector<6x8x128xf32>
      %210 = vector.broadcast %207 : vector<1x8x128xf32> to vector<6x8x128xf32>
      %211 = arith.mulf %210, %209 : vector<6x8x128xf32>
      %212 = arith.addf %176, %211 : vector<6x8x128xf32>
      %c23 = arith.constant 23 : index
      %c0_126 = arith.constant 0 : index
      %213 = vector.load %arg6[%c23, %c0_126] : memref<48x128xf32, #tpu.memory_space<vmem>>, vector<1x128xf32>
      %214 = vector.shape_cast %213 : vector<1x128xf32> to vector<1x128xf32>
      %215 = vector.broadcast %214 : vector<1x128xf32> to vector<8x128xf32>
      %216 = vector.shape_cast %215 : vector<8x128xf32> to vector<1x8x128xf32>
      %c23_127 = arith.constant 23 : index
      %c0_128 = arith.constant 0 : index
      %c0_129 = arith.constant 0 : index
      %c0_130 = arith.constant 0 : index
      %217 = vector.load %arg1[%c23_127, %c0_128, %c0_129, %c0_130] : memref<48x6x8x128xf32, #tpu.memory_space<vmem>>, vector<1x6x8x128xf32>
      %218 = vector.shape_cast %217 : vector<1x6x8x128xf32> to vector<6x8x128xf32>
      %219 = vector.broadcast %216 : vector<1x8x128xf32> to vector<6x8x128xf32>
      %220 = arith.mulf %219, %218 : vector<6x8x128xf32>
      %221 = arith.addf %185, %220 : vector<6x8x128xf32>
      %c24 = arith.constant 24 : index
      %c0_131 = arith.constant 0 : index
      %222 = vector.load %arg6[%c24, %c0_131] : memref<48x128xf32, #tpu.memory_space<vmem>>, vector<1x128xf32>
      %223 = vector.shape_cast %222 : vector<1x128xf32> to vector<1x128xf32>
      %224 = vector.broadcast %223 : vector<1x128xf32> to vector<8x128xf32>
      %225 = vector.shape_cast %224 : vector<8x128xf32> to vector<1x8x128xf32>
      %c24_132 = arith.constant 24 : index
      %c0_133 = arith.constant 0 : index
      %c0_134 = arith.constant 0 : index
      %c0_135 = arith.constant 0 : index
      %226 = vector.load %arg1[%c24_132, %c0_133, %c0_134, %c0_135] : memref<48x6x8x128xf32, #tpu.memory_space<vmem>>, vector<1x6x8x128xf32>
      %227 = vector.shape_cast %226 : vector<1x6x8x128xf32> to vector<6x8x128xf32>
      %228 = vector.broadcast %225 : vector<1x8x128xf32> to vector<6x8x128xf32>
      %229 = arith.mulf %228, %227 : vector<6x8x128xf32>
      %230 = arith.addf %194, %229 : vector<6x8x128xf32>
      %c25 = arith.constant 25 : index
      %c0_136 = arith.constant 0 : index
      %231 = vector.load %arg6[%c25, %c0_136] : memref<48x128xf32, #tpu.memory_space<vmem>>, vector<1x128xf32>
      %232 = vector.shape_cast %231 : vector<1x128xf32> to vector<1x128xf32>
      %233 = vector.broadcast %232 : vector<1x128xf32> to vector<8x128xf32>
      %234 = vector.shape_cast %233 : vector<8x128xf32> to vector<1x8x128xf32>
      %c25_137 = arith.constant 25 : index
      %c0_138 = arith.constant 0 : index
      %c0_139 = arith.constant 0 : index
      %c0_140 = arith.constant 0 : index
      %235 = vector.load %arg1[%c25_137, %c0_138, %c0_139, %c0_140] : memref<48x6x8x128xf32, #tpu.memory_space<vmem>>, vector<1x6x8x128xf32>
      %236 = vector.shape_cast %235 : vector<1x6x8x128xf32> to vector<6x8x128xf32>
      %237 = vector.broadcast %234 : vector<1x8x128xf32> to vector<6x8x128xf32>
      %238 = arith.mulf %237, %236 : vector<6x8x128xf32>
      %239 = arith.addf %203, %238 : vector<6x8x128xf32>
      %c26 = arith.constant 26 : index
      %c0_141 = arith.constant 0 : index
      %240 = vector.load %arg6[%c26, %c0_141] : memref<48x128xf32, #tpu.memory_space<vmem>>, vector<1x128xf32>
      %241 = vector.shape_cast %240 : vector<1x128xf32> to vector<1x128xf32>
      %242 = vector.broadcast %241 : vector<1x128xf32> to vector<8x128xf32>
      %243 = vector.shape_cast %242 : vector<8x128xf32> to vector<1x8x128xf32>
      %c26_142 = arith.constant 26 : index
      %c0_143 = arith.constant 0 : index
      %c0_144 = arith.constant 0 : index
      %c0_145 = arith.constant 0 : index
      %244 = vector.load %arg1[%c26_142, %c0_143, %c0_144, %c0_145] : memref<48x6x8x128xf32, #tpu.memory_space<vmem>>, vector<1x6x8x128xf32>
      %245 = vector.shape_cast %244 : vector<1x6x8x128xf32> to vector<6x8x128xf32>
      %246 = vector.broadcast %243 : vector<1x8x128xf32> to vector<6x8x128xf32>
      %247 = arith.mulf %246, %245 : vector<6x8x128xf32>
      %248 = arith.addf %212, %247 : vector<6x8x128xf32>
      %c27 = arith.constant 27 : index
      %c0_146 = arith.constant 0 : index
      %249 = vector.load %arg6[%c27, %c0_146] : memref<48x128xf32, #tpu.memory_space<vmem>>, vector<1x128xf32>
      %250 = vector.shape_cast %249 : vector<1x128xf32> to vector<1x128xf32>
      %251 = vector.broadcast %250 : vector<1x128xf32> to vector<8x128xf32>
      %252 = vector.shape_cast %251 : vector<8x128xf32> to vector<1x8x128xf32>
      %c27_147 = arith.constant 27 : index
      %c0_148 = arith.constant 0 : index
      %c0_149 = arith.constant 0 : index
      %c0_150 = arith.constant 0 : index
      %253 = vector.load %arg1[%c27_147, %c0_148, %c0_149, %c0_150] : memref<48x6x8x128xf32, #tpu.memory_space<vmem>>, vector<1x6x8x128xf32>
      %254 = vector.shape_cast %253 : vector<1x6x8x128xf32> to vector<6x8x128xf32>
      %255 = vector.broadcast %252 : vector<1x8x128xf32> to vector<6x8x128xf32>
      %256 = arith.mulf %255, %254 : vector<6x8x128xf32>
      %257 = arith.addf %221, %256 : vector<6x8x128xf32>
      %c28 = arith.constant 28 : index
      %c0_151 = arith.constant 0 : index
      %258 = vector.load %arg6[%c28, %c0_151] : memref<48x128xf32, #tpu.memory_space<vmem>>, vector<1x128xf32>
      %259 = vector.shape_cast %258 : vector<1x128xf32> to vector<1x128xf32>
      %260 = vector.broadcast %259 : vector<1x128xf32> to vector<8x128xf32>
      %261 = vector.shape_cast %260 : vector<8x128xf32> to vector<1x8x128xf32>
      %c28_152 = arith.constant 28 : index
      %c0_153 = arith.constant 0 : index
      %c0_154 = arith.constant 0 : index
      %c0_155 = arith.constant 0 : index
      %262 = vector.load %arg1[%c28_152, %c0_153, %c0_154, %c0_155] : memref<48x6x8x128xf32, #tpu.memory_space<vmem>>, vector<1x6x8x128xf32>
      %263 = vector.shape_cast %262 : vector<1x6x8x128xf32> to vector<6x8x128xf32>
      %264 = vector.broadcast %261 : vector<1x8x128xf32> to vector<6x8x128xf32>
      %265 = arith.mulf %264, %263 : vector<6x8x128xf32>
      %266 = arith.addf %230, %265 : vector<6x8x128xf32>
      %c29 = arith.constant 29 : index
      %c0_156 = arith.constant 0 : index
      %267 = vector.load %arg6[%c29, %c0_156] : memref<48x128xf32, #tpu.memory_space<vmem>>, vector<1x128xf32>
      %268 = vector.shape_cast %267 : vector<1x128xf32> to vector<1x128xf32>
      %269 = vector.broadcast %268 : vector<1x128xf32> to vector<8x128xf32>
      %270 = vector.shape_cast %269 : vector<8x128xf32> to vector<1x8x128xf32>
      %c29_157 = arith.constant 29 : index
      %c0_158 = arith.constant 0 : index
      %c0_159 = arith.constant 0 : index
      %c0_160 = arith.constant 0 : index
      %271 = vector.load %arg1[%c29_157, %c0_158, %c0_159, %c0_160] : memref<48x6x8x128xf32, #tpu.memory_space<vmem>>, vector<1x6x8x128xf32>
      %272 = vector.shape_cast %271 : vector<1x6x8x128xf32> to vector<6x8x128xf32>
      %273 = vector.broadcast %270 : vector<1x8x128xf32> to vector<6x8x128xf32>
      %274 = arith.mulf %273, %272 : vector<6x8x128xf32>
      %275 = arith.addf %239, %274 : vector<6x8x128xf32>
      %c30 = arith.constant 30 : index
      %c0_161 = arith.constant 0 : index
      %276 = vector.load %arg6[%c30, %c0_161] : memref<48x128xf32, #tpu.memory_space<vmem>>, vector<1x128xf32>
      %277 = vector.shape_cast %276 : vector<1x128xf32> to vector<1x128xf32>
      %278 = vector.broadcast %277 : vector<1x128xf32> to vector<8x128xf32>
      %279 = vector.shape_cast %278 : vector<8x128xf32> to vector<1x8x128xf32>
      %c30_162 = arith.constant 30 : index
      %c0_163 = arith.constant 0 : index
      %c0_164 = arith.constant 0 : index
      %c0_165 = arith.constant 0 : index
      %280 = vector.load %arg1[%c30_162, %c0_163, %c0_164, %c0_165] : memref<48x6x8x128xf32, #tpu.memory_space<vmem>>, vector<1x6x8x128xf32>
      %281 = vector.shape_cast %280 : vector<1x6x8x128xf32> to vector<6x8x128xf32>
      %282 = vector.broadcast %279 : vector<1x8x128xf32> to vector<6x8x128xf32>
      %283 = arith.mulf %282, %281 : vector<6x8x128xf32>
      %284 = arith.addf %248, %283 : vector<6x8x128xf32>
      %c31 = arith.constant 31 : index
      %c0_166 = arith.constant 0 : index
      %285 = vector.load %arg6[%c31, %c0_166] : memref<48x128xf32, #tpu.memory_space<vmem>>, vector<1x128xf32>
      %286 = vector.shape_cast %285 : vector<1x128xf32> to vector<1x128xf32>
      %287 = vector.broadcast %286 : vector<1x128xf32> to vector<8x128xf32>
      %288 = vector.shape_cast %287 : vector<8x128xf32> to vector<1x8x128xf32>
      %c31_167 = arith.constant 31 : index
      %c0_168 = arith.constant 0 : index
      %c0_169 = arith.constant 0 : index
      %c0_170 = arith.constant 0 : index
      %289 = vector.load %arg1[%c31_167, %c0_168, %c0_169, %c0_170] : memref<48x6x8x128xf32, #tpu.memory_space<vmem>>, vector<1x6x8x128xf32>
      %290 = vector.shape_cast %289 : vector<1x6x8x128xf32> to vector<6x8x128xf32>
      %291 = vector.broadcast %288 : vector<1x8x128xf32> to vector<6x8x128xf32>
      %292 = arith.mulf %291, %290 : vector<6x8x128xf32>
      %293 = arith.addf %257, %292 : vector<6x8x128xf32>
      %c32 = arith.constant 32 : index
      %c0_171 = arith.constant 0 : index
      %294 = vector.load %arg6[%c32, %c0_171] : memref<48x128xf32, #tpu.memory_space<vmem>>, vector<1x128xf32>
      %295 = vector.shape_cast %294 : vector<1x128xf32> to vector<1x128xf32>
      %296 = vector.broadcast %295 : vector<1x128xf32> to vector<8x128xf32>
      %297 = vector.shape_cast %296 : vector<8x128xf32> to vector<1x8x128xf32>
      %c32_172 = arith.constant 32 : index
      %c0_173 = arith.constant 0 : index
      %c0_174 = arith.constant 0 : index
      %c0_175 = arith.constant 0 : index
      %298 = vector.load %arg1[%c32_172, %c0_173, %c0_174, %c0_175] : memref<48x6x8x128xf32, #tpu.memory_space<vmem>>, vector<1x6x8x128xf32>
      %299 = vector.shape_cast %298 : vector<1x6x8x128xf32> to vector<6x8x128xf32>
      %300 = vector.broadcast %297 : vector<1x8x128xf32> to vector<6x8x128xf32>
      %301 = arith.mulf %300, %299 : vector<6x8x128xf32>
      %302 = arith.addf %266, %301 : vector<6x8x128xf32>
      %c33 = arith.constant 33 : index
      %c0_176 = arith.constant 0 : index
      %303 = vector.load %arg6[%c33, %c0_176] : memref<48x128xf32, #tpu.memory_space<vmem>>, vector<1x128xf32>
      %304 = vector.shape_cast %303 : vector<1x128xf32> to vector<1x128xf32>
      %305 = vector.broadcast %304 : vector<1x128xf32> to vector<8x128xf32>
      %306 = vector.shape_cast %305 : vector<8x128xf32> to vector<1x8x128xf32>
      %c33_177 = arith.constant 33 : index
      %c0_178 = arith.constant 0 : index
      %c0_179 = arith.constant 0 : index
      %c0_180 = arith.constant 0 : index
      %307 = vector.load %arg1[%c33_177, %c0_178, %c0_179, %c0_180] : memref<48x6x8x128xf32, #tpu.memory_space<vmem>>, vector<1x6x8x128xf32>
      %308 = vector.shape_cast %307 : vector<1x6x8x128xf32> to vector<6x8x128xf32>
      %309 = vector.broadcast %306 : vector<1x8x128xf32> to vector<6x8x128xf32>
      %310 = arith.mulf %309, %308 : vector<6x8x128xf32>
      %311 = arith.addf %275, %310 : vector<6x8x128xf32>
      %c34 = arith.constant 34 : index
      %c0_181 = arith.constant 0 : index
      %312 = vector.load %arg6[%c34, %c0_181] : memref<48x128xf32, #tpu.memory_space<vmem>>, vector<1x128xf32>
      %313 = vector.shape_cast %312 : vector<1x128xf32> to vector<1x128xf32>
      %314 = vector.broadcast %313 : vector<1x128xf32> to vector<8x128xf32>
      %315 = vector.shape_cast %314 : vector<8x128xf32> to vector<1x8x128xf32>
      %c34_182 = arith.constant 34 : index
      %c0_183 = arith.constant 0 : index
      %c0_184 = arith.constant 0 : index
      %c0_185 = arith.constant 0 : index
      %316 = vector.load %arg1[%c34_182, %c0_183, %c0_184, %c0_185] : memref<48x6x8x128xf32, #tpu.memory_space<vmem>>, vector<1x6x8x128xf32>
      %317 = vector.shape_cast %316 : vector<1x6x8x128xf32> to vector<6x8x128xf32>
      %318 = vector.broadcast %315 : vector<1x8x128xf32> to vector<6x8x128xf32>
      %319 = arith.mulf %318, %317 : vector<6x8x128xf32>
      %320 = arith.addf %284, %319 : vector<6x8x128xf32>
      %c35 = arith.constant 35 : index
      %c0_186 = arith.constant 0 : index
      %321 = vector.load %arg6[%c35, %c0_186] : memref<48x128xf32, #tpu.memory_space<vmem>>, vector<1x128xf32>
      %322 = vector.shape_cast %321 : vector<1x128xf32> to vector<1x128xf32>
      %323 = vector.broadcast %322 : vector<1x128xf32> to vector<8x128xf32>
      %324 = vector.shape_cast %323 : vector<8x128xf32> to vector<1x8x128xf32>
      %c35_187 = arith.constant 35 : index
      %c0_188 = arith.constant 0 : index
      %c0_189 = arith.constant 0 : index
      %c0_190 = arith.constant 0 : index
      %325 = vector.load %arg1[%c35_187, %c0_188, %c0_189, %c0_190] : memref<48x6x8x128xf32, #tpu.memory_space<vmem>>, vector<1x6x8x128xf32>
      %326 = vector.shape_cast %325 : vector<1x6x8x128xf32> to vector<6x8x128xf32>
      %327 = vector.broadcast %324 : vector<1x8x128xf32> to vector<6x8x128xf32>
      %328 = arith.mulf %327, %326 : vector<6x8x128xf32>
      %329 = arith.addf %293, %328 : vector<6x8x128xf32>
      %c36 = arith.constant 36 : index
      %c0_191 = arith.constant 0 : index
      %330 = vector.load %arg6[%c36, %c0_191] : memref<48x128xf32, #tpu.memory_space<vmem>>, vector<1x128xf32>
      %331 = vector.shape_cast %330 : vector<1x128xf32> to vector<1x128xf32>
      %332 = vector.broadcast %331 : vector<1x128xf32> to vector<8x128xf32>
      %333 = vector.shape_cast %332 : vector<8x128xf32> to vector<1x8x128xf32>
      %c36_192 = arith.constant 36 : index
      %c0_193 = arith.constant 0 : index
      %c0_194 = arith.constant 0 : index
      %c0_195 = arith.constant 0 : index
      %334 = vector.load %arg1[%c36_192, %c0_193, %c0_194, %c0_195] : memref<48x6x8x128xf32, #tpu.memory_space<vmem>>, vector<1x6x8x128xf32>
      %335 = vector.shape_cast %334 : vector<1x6x8x128xf32> to vector<6x8x128xf32>
      %336 = vector.broadcast %333 : vector<1x8x128xf32> to vector<6x8x128xf32>
      %337 = arith.mulf %336, %335 : vector<6x8x128xf32>
      %338 = arith.addf %302, %337 : vector<6x8x128xf32>
      %c37 = arith.constant 37 : index
      %c0_196 = arith.constant 0 : index
      %339 = vector.load %arg6[%c37, %c0_196] : memref<48x128xf32, #tpu.memory_space<vmem>>, vector<1x128xf32>
      %340 = vector.shape_cast %339 : vector<1x128xf32> to vector<1x128xf32>
      %341 = vector.broadcast %340 : vector<1x128xf32> to vector<8x128xf32>
      %342 = vector.shape_cast %341 : vector<8x128xf32> to vector<1x8x128xf32>
      %c37_197 = arith.constant 37 : index
      %c0_198 = arith.constant 0 : index
      %c0_199 = arith.constant 0 : index
      %c0_200 = arith.constant 0 : index
      %343 = vector.load %arg1[%c37_197, %c0_198, %c0_199, %c0_200] : memref<48x6x8x128xf32, #tpu.memory_space<vmem>>, vector<1x6x8x128xf32>
      %344 = vector.shape_cast %343 : vector<1x6x8x128xf32> to vector<6x8x128xf32>
      %345 = vector.broadcast %342 : vector<1x8x128xf32> to vector<6x8x128xf32>
      %346 = arith.mulf %345, %344 : vector<6x8x128xf32>
      %347 = arith.addf %311, %346 : vector<6x8x128xf32>
      %c38 = arith.constant 38 : index
      %c0_201 = arith.constant 0 : index
      %348 = vector.load %arg6[%c38, %c0_201] : memref<48x128xf32, #tpu.memory_space<vmem>>, vector<1x128xf32>
      %349 = vector.shape_cast %348 : vector<1x128xf32> to vector<1x128xf32>
      %350 = vector.broadcast %349 : vector<1x128xf32> to vector<8x128xf32>
      %351 = vector.shape_cast %350 : vector<8x128xf32> to vector<1x8x128xf32>
      %c38_202 = arith.constant 38 : index
      %c0_203 = arith.constant 0 : index
      %c0_204 = arith.constant 0 : index
      %c0_205 = arith.constant 0 : index
      %352 = vector.load %arg1[%c38_202, %c0_203, %c0_204, %c0_205] : memref<48x6x8x128xf32, #tpu.memory_space<vmem>>, vector<1x6x8x128xf32>
      %353 = vector.shape_cast %352 : vector<1x6x8x128xf32> to vector<6x8x128xf32>
      %354 = vector.broadcast %351 : vector<1x8x128xf32> to vector<6x8x128xf32>
      %355 = arith.mulf %354, %353 : vector<6x8x128xf32>
      %356 = arith.addf %320, %355 : vector<6x8x128xf32>
      %c39 = arith.constant 39 : index
      %c0_206 = arith.constant 0 : index
      %357 = vector.load %arg6[%c39, %c0_206] : memref<48x128xf32, #tpu.memory_space<vmem>>, vector<1x128xf32>
      %358 = vector.shape_cast %357 : vector<1x128xf32> to vector<1x128xf32>
      %359 = vector.broadcast %358 : vector<1x128xf32> to vector<8x128xf32>
      %360 = vector.shape_cast %359 : vector<8x128xf32> to vector<1x8x128xf32>
      %c39_207 = arith.constant 39 : index
      %c0_208 = arith.constant 0 : index
      %c0_209 = arith.constant 0 : index
      %c0_210 = arith.constant 0 : index
      %361 = vector.load %arg1[%c39_207, %c0_208, %c0_209, %c0_210] : memref<48x6x8x128xf32, #tpu.memory_space<vmem>>, vector<1x6x8x128xf32>
      %362 = vector.shape_cast %361 : vector<1x6x8x128xf32> to vector<6x8x128xf32>
      %363 = vector.broadcast %360 : vector<1x8x128xf32> to vector<6x8x128xf32>
      %364 = arith.mulf %363, %362 : vector<6x8x128xf32>
      %365 = arith.addf %329, %364 : vector<6x8x128xf32>
      %c40 = arith.constant 40 : index
      %c0_211 = arith.constant 0 : index
      %366 = vector.load %arg6[%c40, %c0_211] : memref<48x128xf32, #tpu.memory_space<vmem>>, vector<1x128xf32>
      %367 = vector.shape_cast %366 : vector<1x128xf32> to vector<1x128xf32>
      %368 = vector.broadcast %367 : vector<1x128xf32> to vector<8x128xf32>
      %369 = vector.shape_cast %368 : vector<8x128xf32> to vector<1x8x128xf32>
      %c40_212 = arith.constant 40 : index
      %c0_213 = arith.constant 0 : index
      %c0_214 = arith.constant 0 : index
      %c0_215 = arith.constant 0 : index
      %370 = vector.load %arg1[%c40_212, %c0_213, %c0_214, %c0_215] : memref<48x6x8x128xf32, #tpu.memory_space<vmem>>, vector<1x6x8x128xf32>
      %371 = vector.shape_cast %370 : vector<1x6x8x128xf32> to vector<6x8x128xf32>
      %372 = vector.broadcast %369 : vector<1x8x128xf32> to vector<6x8x128xf32>
      %373 = arith.mulf %372, %371 : vector<6x8x128xf32>
      %374 = arith.addf %338, %373 : vector<6x8x128xf32>
      %c41 = arith.constant 41 : index
      %c0_216 = arith.constant 0 : index
      %375 = vector.load %arg6[%c41, %c0_216] : memref<48x128xf32, #tpu.memory_space<vmem>>, vector<1x128xf32>
      %376 = vector.shape_cast %375 : vector<1x128xf32> to vector<1x128xf32>
      %377 = vector.broadcast %376 : vector<1x128xf32> to vector<8x128xf32>
      %378 = vector.shape_cast %377 : vector<8x128xf32> to vector<1x8x128xf32>
      %c41_217 = arith.constant 41 : index
      %c0_218 = arith.constant 0 : index
      %c0_219 = arith.constant 0 : index
      %c0_220 = arith.constant 0 : index
      %379 = vector.load %arg1[%c41_217, %c0_218, %c0_219, %c0_220] : memref<48x6x8x128xf32, #tpu.memory_space<vmem>>, vector<1x6x8x128xf32>
      %380 = vector.shape_cast %379 : vector<1x6x8x128xf32> to vector<6x8x128xf32>
      %381 = vector.broadcast %378 : vector<1x8x128xf32> to vector<6x8x128xf32>
      %382 = arith.mulf %381, %380 : vector<6x8x128xf32>
      %383 = arith.addf %347, %382 : vector<6x8x128xf32>
      %c42 = arith.constant 42 : index
      %c0_221 = arith.constant 0 : index
      %384 = vector.load %arg6[%c42, %c0_221] : memref<48x128xf32, #tpu.memory_space<vmem>>, vector<1x128xf32>
      %385 = vector.shape_cast %384 : vector<1x128xf32> to vector<1x128xf32>
      %386 = vector.broadcast %385 : vector<1x128xf32> to vector<8x128xf32>
      %387 = vector.shape_cast %386 : vector<8x128xf32> to vector<1x8x128xf32>
      %c42_222 = arith.constant 42 : index
      %c0_223 = arith.constant 0 : index
      %c0_224 = arith.constant 0 : index
      %c0_225 = arith.constant 0 : index
      %388 = vector.load %arg1[%c42_222, %c0_223, %c0_224, %c0_225] : memref<48x6x8x128xf32, #tpu.memory_space<vmem>>, vector<1x6x8x128xf32>
      %389 = vector.shape_cast %388 : vector<1x6x8x128xf32> to vector<6x8x128xf32>
      %390 = vector.broadcast %387 : vector<1x8x128xf32> to vector<6x8x128xf32>
      %391 = arith.mulf %390, %389 : vector<6x8x128xf32>
      %392 = arith.addf %356, %391 : vector<6x8x128xf32>
      %c43 = arith.constant 43 : index
      %c0_226 = arith.constant 0 : index
      %393 = vector.load %arg6[%c43, %c0_226] : memref<48x128xf32, #tpu.memory_space<vmem>>, vector<1x128xf32>
      %394 = vector.shape_cast %393 : vector<1x128xf32> to vector<1x128xf32>
      %395 = vector.broadcast %394 : vector<1x128xf32> to vector<8x128xf32>
      %396 = vector.shape_cast %395 : vector<8x128xf32> to vector<1x8x128xf32>
      %c43_227 = arith.constant 43 : index
      %c0_228 = arith.constant 0 : index
      %c0_229 = arith.constant 0 : index
      %c0_230 = arith.constant 0 : index
      %397 = vector.load %arg1[%c43_227, %c0_228, %c0_229, %c0_230] : memref<48x6x8x128xf32, #tpu.memory_space<vmem>>, vector<1x6x8x128xf32>
      %398 = vector.shape_cast %397 : vector<1x6x8x128xf32> to vector<6x8x128xf32>
      %399 = vector.broadcast %396 : vector<1x8x128xf32> to vector<6x8x128xf32>
      %400 = arith.mulf %399, %398 : vector<6x8x128xf32>
      %401 = arith.addf %365, %400 : vector<6x8x128xf32>
      %c44 = arith.constant 44 : index
      %c0_231 = arith.constant 0 : index
      %402 = vector.load %arg6[%c44, %c0_231] : memref<48x128xf32, #tpu.memory_space<vmem>>, vector<1x128xf32>
      %403 = vector.shape_cast %402 : vector<1x128xf32> to vector<1x128xf32>
      %404 = vector.broadcast %403 : vector<1x128xf32> to vector<8x128xf32>
      %405 = vector.shape_cast %404 : vector<8x128xf32> to vector<1x8x128xf32>
      %c44_232 = arith.constant 44 : index
      %c0_233 = arith.constant 0 : index
      %c0_234 = arith.constant 0 : index
      %c0_235 = arith.constant 0 : index
      %406 = vector.load %arg1[%c44_232, %c0_233, %c0_234, %c0_235] : memref<48x6x8x128xf32, #tpu.memory_space<vmem>>, vector<1x6x8x128xf32>
      %407 = vector.shape_cast %406 : vector<1x6x8x128xf32> to vector<6x8x128xf32>
      %408 = vector.broadcast %405 : vector<1x8x128xf32> to vector<6x8x128xf32>
      %409 = arith.mulf %408, %407 : vector<6x8x128xf32>
      %410 = arith.addf %374, %409 : vector<6x8x128xf32>
      %c45 = arith.constant 45 : index
      %c0_236 = arith.constant 0 : index
      %411 = vector.load %arg6[%c45, %c0_236] : memref<48x128xf32, #tpu.memory_space<vmem>>, vector<1x128xf32>
      %412 = vector.shape_cast %411 : vector<1x128xf32> to vector<1x128xf32>
      %413 = vector.broadcast %412 : vector<1x128xf32> to vector<8x128xf32>
      %414 = vector.shape_cast %413 : vector<8x128xf32> to vector<1x8x128xf32>
      %c45_237 = arith.constant 45 : index
      %c0_238 = arith.constant 0 : index
      %c0_239 = arith.constant 0 : index
      %c0_240 = arith.constant 0 : index
      %415 = vector.load %arg1[%c45_237, %c0_238, %c0_239, %c0_240] : memref<48x6x8x128xf32, #tpu.memory_space<vmem>>, vector<1x6x8x128xf32>
      %416 = vector.shape_cast %415 : vector<1x6x8x128xf32> to vector<6x8x128xf32>
      %417 = vector.broadcast %414 : vector<1x8x128xf32> to vector<6x8x128xf32>
      %418 = arith.mulf %417, %416 : vector<6x8x128xf32>
      %419 = arith.addf %383, %418 : vector<6x8x128xf32>
      %c46 = arith.constant 46 : index
      %c0_241 = arith.constant 0 : index
      %420 = vector.load %arg6[%c46, %c0_241] : memref<48x128xf32, #tpu.memory_space<vmem>>, vector<1x128xf32>
      %421 = vector.shape_cast %420 : vector<1x128xf32> to vector<1x128xf32>
      %422 = vector.broadcast %421 : vector<1x128xf32> to vector<8x128xf32>
      %423 = vector.shape_cast %422 : vector<8x128xf32> to vector<1x8x128xf32>
      %c46_242 = arith.constant 46 : index
      %c0_243 = arith.constant 0 : index
      %c0_244 = arith.constant 0 : index
      %c0_245 = arith.constant 0 : index
      %424 = vector.load %arg1[%c46_242, %c0_243, %c0_244, %c0_245] : memref<48x6x8x128xf32, #tpu.memory_space<vmem>>, vector<1x6x8x128xf32>
      %425 = vector.shape_cast %424 : vector<1x6x8x128xf32> to vector<6x8x128xf32>
      %426 = vector.broadcast %423 : vector<1x8x128xf32> to vector<6x8x128xf32>
      %427 = arith.mulf %426, %425 : vector<6x8x128xf32>
      %428 = arith.addf %392, %427 : vector<6x8x128xf32>
      %c47 = arith.constant 47 : index
      %c0_246 = arith.constant 0 : index
      %429 = vector.load %arg6[%c47, %c0_246] : memref<48x128xf32, #tpu.memory_space<vmem>>, vector<1x128xf32>
      %430 = vector.shape_cast %429 : vector<1x128xf32> to vector<1x128xf32>
      %431 = vector.broadcast %430 : vector<1x128xf32> to vector<8x128xf32>
      %432 = vector.shape_cast %431 : vector<8x128xf32> to vector<1x8x128xf32>
      %c47_247 = arith.constant 47 : index
      %c0_248 = arith.constant 0 : index
      %c0_249 = arith.constant 0 : index
      %c0_250 = arith.constant 0 : index
      %433 = vector.load %arg1[%c47_247, %c0_248, %c0_249, %c0_250] : memref<48x6x8x128xf32, #tpu.memory_space<vmem>>, vector<1x6x8x128xf32>
      %434 = vector.shape_cast %433 : vector<1x6x8x128xf32> to vector<6x8x128xf32>
      %435 = vector.broadcast %432 : vector<1x8x128xf32> to vector<6x8x128xf32>
      %436 = arith.mulf %435, %434 : vector<6x8x128xf32>
      %437 = arith.addf %401, %436 : vector<6x8x128xf32>
      %438 = arith.addf %410, %419 : vector<6x8x128xf32>
      %439 = arith.addf %438, %428 : vector<6x8x128xf32>
      %440 = arith.addf %439, %437 : vector<6x8x128xf32>
      %441 = vector.extract_strided_slice %440 {offsets = [0, 0, 0], sizes = [2, 8, 128], strides = [1, 1, 1]} : vector<6x8x128xf32> to vector<2x8x128xf32>
      %442 = vector.extract_strided_slice %440 {offsets = [2, 0, 0], sizes = [4, 8, 128], strides = [1, 1, 1]} : vector<6x8x128xf32> to vector<4x8x128xf32>
      %cst_251 = arith.constant 1.600000e+00 : f32
      %443 = vector.broadcast %cst_251 : f32 to vector<2x8x128xf32>
      %444 = arith.mulf %443, %441 : vector<2x8x128xf32>
      %cst_252 = arith.constant -6.000000e-01 : f32
      %445 = vector.broadcast %cst_252 : f32 to vector<2x8x128xf32>
      %446 = arith.mulf %445, %arg8 : vector<2x8x128xf32>
      %447 = arith.addf %444, %446 : vector<2x8x128xf32>
      %448 = vector.shape_cast %447 : vector<2x8x128xf32> to vector<16x128xf32>
      %c0_253 = arith.constant 0 : index
      %c0_254 = arith.constant 0 : index
      %449 = vector.load %arg6[%c0_253, %c0_254] : memref<48x128xf32, #tpu.memory_space<vmem>>, vector<16x128xf32>
      tpu.vector_store %arg6[%c0_253, %c0_254], %448 {strides = array<i32>} : memref<48x128xf32, #tpu.memory_space<vmem>>, vector<16x128xf32>,
      %cst_255 = arith.constant 1.600000e+00 : f32
      %450 = vector.broadcast %cst_255 : f32 to vector<4x8x128xf32>
      %451 = arith.mulf %450, %442 : vector<4x8x128xf32>
      %cst_256 = arith.constant -6.000000e-01 : f32
      %452 = vector.broadcast %cst_256 : f32 to vector<4x8x128xf32>
      %453 = arith.mulf %452, %arg9 : vector<4x8x128xf32>
      %454 = arith.addf %451, %453 : vector<4x8x128xf32>
      %cst_257 = arith.constant 1.000000e+01 : f32
      %455 = vector.broadcast %cst_257 : f32 to vector<4x8x128xf32>
      %456 = arith.mulf %arg10, %455 : vector<4x8x128xf32>
      %457 = arith.addf %454, %456 : vector<4x8x128xf32>
      %c0_258 = arith.constant 0 : index
      %c0_259 = arith.constant 0 : index
      %c0_260 = arith.constant 0 : index
      %458 = vector.load %arg3[%c0_258, %c0_259, %c0_260] : memref<4x8x128xf32, #tpu.memory_space<vmem>>, vector<4x8x128xf32>
      %c0_261 = arith.constant 0 : index
      %c0_262 = arith.constant 0 : index
      %c0_263 = arith.constant 0 : index
      %459 = vector.load %arg4[%c0_261, %c0_262, %c0_263] : memref<4x8x128xf32, #tpu.memory_space<vmem>>, vector<4x8x128xf32>
      %460 = arith.maximumf %458, %457 : vector<4x8x128xf32>
      %461 = arith.minimumf %459, %460 : vector<4x8x128xf32>
      %462 = arith.subf %454, %461 : vector<4x8x128xf32>
      %cst_264 = arith.constant 1.000000e-01 : f32
      %463 = vector.broadcast %cst_264 : f32 to vector<4x8x128xf32>
      %464 = arith.mulf %463, %462 : vector<4x8x128xf32>
      %465 = arith.addf %arg10, %464 : vector<4x8x128xf32>
      %cst_265 = arith.constant 1.000000e-01 : f32
      %466 = vector.broadcast %cst_265 : f32 to vector<4x8x128xf32>
      %467 = arith.mulf %466, %461 : vector<4x8x128xf32>
      %468 = arith.subf %467, %465 : vector<4x8x128xf32>
      %469 = vector.shape_cast %468 : vector<4x8x128xf32> to vector<32x128xf32>
      %c16_266 = arith.constant 16 : index
      %c0_267 = arith.constant 0 : index
      %470 = vector.load %arg6[%c16_266, %c0_267] : memref<48x128xf32, #tpu.memory_space<vmem>>, vector<32x128xf32>
      tpu.vector_store %arg6[%c16_266, %c0_267], %469 {strides = array<i32>} : memref<48x128xf32, #tpu.memory_space<vmem>>, vector<32x128xf32>,
      scf.yield %447, %461, %465 : vector<2x8x128xf32>, vector<4x8x128xf32>, vector<4x8x128xf32>
    }
    %c0_4 = arith.constant 0 : index
    %c0_5 = arith.constant 0 : index
    %c0_6 = arith.constant 0 : index
    %7 = vector.load %arg5[%c0_4, %c0_5, %c0_6] : memref<2x8x128xf32, #tpu.memory_space<vmem>>, vector<2x8x128xf32>
    tpu.vector_store %arg5[%c0_4, %c0_5, %c0_6], %6#0 {strides = array<i32>} : memref<2x8x128xf32, #tpu.memory_space<vmem>>, vector<2x8x128xf32>,
    return
  }
  func.func @transform_0(%arg0: i32) -> (i32, i32, i32, i32) {
    %c0_i32 = arith.constant 0 : i32
    %c0_i32_0 = arith.constant 0 : i32
    %c0_i32_1 = arith.constant 0 : i32
    %c0_i32_2 = arith.constant 0 : i32
    return %c0_i32, %c0_i32_0, %c0_i32_1, %arg0 : i32, i32, i32, i32
  }
  func.func @transform_1(%arg0: i32) -> (i32, i32, i32) {
    %c0_i32 = arith.constant 0 : i32
    %c0_i32_0 = arith.constant 0 : i32
    %c0_i32_1 = arith.constant 0 : i32
    return %c0_i32, %c0_i32_0, %arg0 : i32, i32, i32
  }
  func.func @transform_2(%arg0: i32) -> (i32, i32, i32) {
    %c0_i32 = arith.constant 0 : i32
    %c0_i32_0 = arith.constant 0 : i32
    %c0_i32_1 = arith.constant 0 : i32
    return %c0_i32, %c0_i32_0, %arg0 : i32, i32, i32
  }
  func.func @transform_3(%arg0: i32) -> (i32, i32, i32) {
    %c0_i32 = arith.constant 0 : i32
    %c0_i32_0 = arith.constant 0 : i32
    %c0_i32_1 = arith.constant 0 : i32
    return %c0_i32, %c0_i32_0, %arg0 : i32, i32, i32
  }
  func.func @transform_4(%arg0: i32) -> (i32, i32, i32) {
    %c0_i32 = arith.constant 0 : i32
    %c0_i32_0 = arith.constant 0 : i32
    %c0_i32_1 = arith.constant 0 : i32
    return %c0_i32, %c0_i32_0, %arg0 : i32, i32, i32
  }
}

</mosaic_0001>

<bundles_post_ra>
// kernel: tpu_custom_call.1
= control target key start
LH: loop header
LB: loop body
LE: loop exit
PB: predicated region body
PF: predicated region fallthrough
CT: control target
= control target key end

     0   :  { %6 = vsyncpa [#allocation3], 0  ;;  %s120_s0 = inlined_call_operand.hbm [shape: f32[16,128], index: 0, kind: input, shape index: {}]   ;;  %s121_s1 = inlined_call_operand.hbm [shape: f32[8,128], index: 1, kind: output, shape index: {}]  }
   0x1   :  { %7 = vsyncpa [#allocation4], 0  ;;  %s12_s8 = sshll.u32 %s120_s0, 4  ;;  %s100_s9 = smov [#allocation2]   ;;  %s13_s8 = int_to_ptr.hbm [resolvable:$true] %s12_s8 }
   0x2   :  { %s14_s10 = sshll.u32 %s100_s9, 4  ;;  %s101_s11 = smov 128   ;;  %s15_s10 = int_to_ptr.vmem [resolvable:$true] %s14_s10 }
   0x3   :  { %s102_s12 = smov 8  }
   0x4   :  { %20 = dma.hbm_to_vmem [thread:$0]  %s13_s8, 256, %s15_s10, [#allocation3], %s101_s11, %s101_s11, %s102_s12  }
   0x5   :  { %96 = dma.done.wait [#allocation3], 256  }
   0x6   :  { %97 = vsyncadd [#allocation3], 4294967040  ;;  %s103_s13 = smov [#allocation5]   ;;  %s34_s17 = sshll.u32 %s121_s1, 4  ;;  %v25_v0 = vld [vmem:[#allocation2 + $0xf] ss:$0 sm:$0xff]  ;;  %s35_s17 = int_to_ptr.hbm [resolvable:$true] %s34_s17 }
   0x7   :  { %s32_s14 = sshll.u32 %s103_s13, 4  ;;  %26 = vst [vmem:[#allocation5] sm:$0xff] %v25_v0  ;;  %s33_s14 = int_to_ptr.vmem [resolvable:$true] %s32_s14 }
   0x8   :  { %37 = dma.vmem_to_hbm [thread:$0]  %s33_s14, 128, %s35_s17, [#allocation4]  }
   0x9   :  { %98 = dma.done.wait [#allocation4], 128  }
   0xa   :  { %99 = vsyncadd [#allocation4], 4294967168 }
   0xb   :  { %42 = vsyncpa [#allocation3], 1 }
   0xc   :  { %43 = vsyncpa [#allocation4], 1 }

// kernel: tpu_custom_call.1
= control target key start
LH: loop header
LB: loop body
LE: loop exit
PB: predicated region body
PF: predicated region fallthrough
CT: control target
= control target key end

     0   :  { %9 = vsyncpa [#allocation4], 0  ;;  %s2529_s0 = inlined_call_operand.hbm [shape: f32[48,6,8,128], index: 0, kind: input, shape index: {}]   ;;  %s2530_s1 = inlined_call_operand.hbm [shape: f32[6,8,128], index: 1, kind: input, shape index: {}]   ;;  %s2531_s2 = inlined_call_operand.hbm [shape: f32[4,8,128], index: 2, kind: input, shape index: {}]   ;;  %s2532_s3 = inlined_call_operand.hbm [shape: f32[4,8,128], index: 3, kind: input, shape index: {}]   ;;  %s2533_s4 = inlined_call_operand.hbm [shape: f32[2,8,128], index: 4, kind: output, shape index: {}]  }
   0x1   :  { %10 = vsyncpa [#allocation7], 0 }
   0x2   :  { %11 = vsyncpa [#allocation10], 0 }
   0x3   :  { %12 = vsyncpa [#allocation5], 0  ;;  %s30_s17 = sshll.u32 %s2530_s1, 4  ;;  %s1602_s18 = smov [#allocation6]   ;;  %s31_s17 = int_to_ptr.hbm [resolvable:$true] %s30_s17 }
   0x4   :  { %s32_s19 = sshll.u32 %s1602_s18, 4  ;;  %s17_s22 = sshll.u32 %s2529_s0, 4  ;;  %s33_s19 = int_to_ptr.vmem [resolvable:$true] %s32_s19  ;;  %s18_s22 = int_to_ptr.hbm [resolvable:$true] %s17_s22 }
   0x5   :  { %s1603_s23 = smov 128   ;;  %s1604_s24 = smov 8  }
   0x6   :  { %38 = dma.hbm_to_vmem [thread:$0]  %s31_s17, 768, %s33_s19, [#allocation7], %s1603_s23, %s1603_s23, %s1604_s24  }
   0x7   :  { %s1605_s25 = smov [#allocation3]   ;;  %s43_s1 = sshll.u32 %s2531_s2, 4  ;;  %s44_s1 = int_to_ptr.hbm [resolvable:$true] %s43_s1 }
   0x8   :  { %s19_s26 = sshll.u32 %s1605_s25, 4  ;;  %s56_s30 = sshll.u32 %s2532_s3, 4  ;;  %s20_s26 = int_to_ptr.vmem [resolvable:$true] %s19_s26  ;;  %s57_s30 = int_to_ptr.hbm [resolvable:$true] %s56_s30 }
   0x9   :  { %25 = dma.hbm_to_vmem [thread:$0]  %s18_s22, 36864, %s20_s26, [#allocation4], %s1603_s23, %s1603_s23, %s1604_s24  }
   0xa   :  { %s1606_s5 = smov [#allocation8]   ;;  %s1607_s7 = smov [#allocation9]  }
   0xb   :  { %s45_s6 = sshll.u32 %s1606_s5, 4  ;;  %s58_s2 = sshll.u32 %s1607_s7, 4  ;;  %s46_s6 = int_to_ptr.vmem [resolvable:$true] %s45_s6  ;;  %s59_s2 = int_to_ptr.vmem [resolvable:$true] %s58_s2 }
   0xc   :  { %51 = dma.hbm_to_vmem [thread:$0]  %s44_s1, 512, %s46_s6, [#allocation7], %s1603_s23, %s1603_s23, %s1604_s24  }
   0xd   :  { %64 = dma.hbm_to_vmem [thread:$0]  %s57_s30, 512, %s59_s2, [#allocation10], %s1603_s23, %s1603_s23, %s1604_s24  }
   0xe   :  { %1550 = dma.done.wait [#allocation4], 36864  }
   0xf   :  { %1551 = vsyncadd [#allocation4], 4294930432 }
  0x10   :  { %1552 = dma.done.wait [#allocation7], 1280  }
  0x11   :  { %1553 = vsyncadd [#allocation7], 4294966016 }
  0x12   :  { %1554 = dma.done.wait [#allocation10], 512  }
  0x13   :  { %1555 = vsyncadd [#allocation10], 4294966784  ;;  %v1608_v0 = vmov 0.0   ;;  %v1659_v1 = vmov 0.0   ;;  %v1661_v2 = vmov 0.0   ;;  %v1663_v3 = vmov 0.0  }
  0x14   :  { %81 = vst [vmem:[#allocation2] sm:$0xff] %v1608_v0  ;;  %v1665_v4 = vmov 0.0   ;;  %v1667_v5 = vmov 0.0   ;;  %v1669_v6 = vmov 0.0   ;;  %v1671_v7 = vmov 0.0   ;;  %s1679_s3 = smov 0  }
  0x15   :  { %82 = vst [vmem:[#allocation2 + $0x8] sm:$0xff] %v1608_v0  ;;  %v1673_v8 = vmov 0.0   ;;  %v1675_v9 = vmov 0.0   ;;  %v1677_v10 = vmov 0.0  }
  0x16   :  { %83 = vst [vmem:[#allocation2 + $0x10] sm:$0xff] %v1608_v0 }
  0x17   :  { %84 = vst [vmem:[#allocation2 + $0x18] sm:$0xff] %v1608_v0 }
  0x18   :  { %85 = vst [vmem:[#allocation2 + $0x20] sm:$0xff] %v1608_v0 }
  0x19   :  { %86 = vst [vmem:[#allocation2 + $0x28] sm:$0xff] %v1608_v0 }
  0x1a LB: > { %v110_v11 = vld [vmem:[#allocation3] sm:$0xff]  ;;  %v111_v12 = vld [vmem:[#allocation3 + $0x8] sm:$0xff]  ;;  %v112_v13 = vld [vmem:[#allocation3 + $0x10] sm:$0xff]  ;;  %s92_s3 = sadd.s32 1, %s1600_s3   ;;  %s1600_s3 = sphi %s1679_s3, %s92_s3   ;;  %v1596_v10 = vphi %v1677_v10, %v2536_v10   ;;  %v1592_v9 = vphi %v1675_v9, %v2535_v9   ;;  %v1588_v8 = vphi %v1673_v8, %v1156_v8   ;;  %v1584_v7 = vphi %v1671_v7, %v2534_v7   ;;  %v1580_v6 = vphi %v1669_v6, %v1158_v6   ;;  %v1576_v5 = vphi %v1667_v5, %v1159_v5   ;;  %v1572_v4 = vphi %v1665_v4, %v1168_v4   ;;  %v1568_v3 = vphi %v1663_v3, %v1169_v3   ;;  %v1564_v2 = vphi %v1661_v2, %v1170_v2   ;;  %v1560_v1 = vphi %v1659_v1, %v1171_v1  }
  0x1b   : > { %v1338_v14 = vld [vmem:[#allocation2] ss:$0 sm:$0xff]  ;;  %v113_v15 = vld [vmem:[#allocation3 + $0x18] sm:$0xff]  ;;  %v114_v16 = vld [vmem:[#allocation3 + $0x20] sm:$0xff]  ;;  %p89_p0 = scmp.ge.s32.totalorder %s92_s3, 1000  }
  0x1c   : > { %v115_v17 = vld [vmem:[#allocation3 + $0x28] sm:$0xff]  ;;  %v103_v18 = vld [vmem:[#allocation6] sm:$0xff]  ;;  %v105_v20 = vld [vmem:[#allocation6 + $0x10] sm:$0xff]  ;;  %v117_v24 = vmul.f32 %v1338_v14, %v110_v11  ;;  %v118_v25 = vmul.f32 %v1338_v14, %v111_v12  ;;  %v119_v26 = vmul.f32 %v1338_v14, %v112_v13  ;;  %v120_v27 = vmul.f32 %v1338_v14, %v113_v15  ;;  %s1192_s10 = sshll.u32 (%p89_p0), %s2533_s4, 4  ;;  %s1609_s11 = smov (%p89_p0), [#allocation11]   ;;  %s1193_s10 = int_to_ptr.hbm [resolvable:$true] %s1192_s10 }
  0x1d   : > { %v104_v19 = vld [vmem:[#allocation6 + $0x8] sm:$0xff]  ;;  %v106_v21 = vld [vmem:[#allocation6 + $0x18] sm:$0xff]  ;;  %v107_v22 = vld [vmem:[#allocation6 + $0x20] sm:$0xff]  ;;  %v121_v28 = vmul.f32 %v1338_v14, %v114_v16  ;;  %v122_v29 = vmul.f32 %v1338_v14, %v115_v17  ;;  %s1190_s12 = sshll.u32 (%p89_p0), %s1609_s11, 4  ;;  %s1191_s12 = int_to_ptr.vmem [resolvable:$true] %s1190_s12 }
  0x1e   : > { %v108_v23 = vld [vmem:[#allocation6 + $0x28] sm:$0xff]  ;;  %v131_v30 = vld [vmem:[#allocation3 + $0x30] sm:$0xff]  ;;  %v132_v31 = vld [vmem:[#allocation3 + $0x38] sm:$0xff]  ;;  %v123_v44 = vadd.f32 %v117_v24, %v103_v18  ;;  %v124_v45 = vadd.f32 %v118_v25, %v104_v19  ;;  %v125_v49 = vadd.f32 %v119_v26, %v105_v20  ;;  %v126_v50 = vadd.f32 %v120_v27, %v106_v21 }
  0x1f   : > { %v133_v32 = vld [vmem:[#allocation3 + $0x40] sm:$0xff]  ;;  %v134_v33 = vld [vmem:[#allocation3 + $0x48] sm:$0xff]  ;;  %v135_v34 = vld [vmem:[#allocation3 + $0x50] sm:$0xff]  ;;  %v127_v51 = vadd.f32 %v121_v28, %v107_v22  ;;  %v128_v52 = vadd.f32 %v122_v29, %v108_v23 }
  0x20   : > { %v136_v35 = vld [vmem:[#allocation3 + $0x58] sm:$0xff]  ;;  %v1339_v36 = vld [vmem:[#allocation2 + $0x1] ss:$0 sm:$0xff]  ;;  %v146_v37 = vld [vmem:[#allocation3 + $0x60] sm:$0xff] }
  0x21   : > { %v147_v38 = vld [vmem:[#allocation3 + $0x68] sm:$0xff]  ;;  %v148_v39 = vld [vmem:[#allocation3 + $0x70] sm:$0xff]  ;;  %v149_v40 = vld [vmem:[#allocation3 + $0x78] sm:$0xff]  ;;  %v138_v55 = vmul.f32 %v1339_v36, %v131_v30  ;;  %v139_v56 = vmul.f32 %v1339_v36, %v132_v31  ;;  %v1714_v57 = vmul.f32 %v1339_v36, %v133_v32  ;;  %v1716_v58 = vmul.f32 %v1339_v36, %v134_v33 }
  0x22   : > { %v150_v41 = vld [vmem:[#allocation3 + $0x80] sm:$0xff]  ;;  %v151_v42 = vld [vmem:[#allocation3 + $0x88] sm:$0xff]  ;;  %v1340_v43 = vld [vmem:[#allocation2 + $0x2] ss:$0 sm:$0xff]  ;;  %v142_v63 = vmul.f32 %v1339_v36, %v135_v34  ;;  %v143_v0 = vmul.f32 %v1339_v36, %v136_v35 }
  0x23   : > { %v161_v46 = vld [vmem:[#allocation3 + $0x90] sm:$0xff]  ;;  %v162_v47 = vld [vmem:[#allocation3 + $0x98] sm:$0xff]  ;;  %v163_v48 = vld [vmem:[#allocation3 + $0xa0] sm:$0xff]  ;;  %v1718_v11 = vmul.f32 %v1340_v43, %v146_v37  ;;  %v1720_v12 = vmul.f32 %v1340_v43, %v147_v38  ;;  %v1722_v16 = vmul.f32 %v1340_v43, %v148_v39  ;;  %v1724_v17 = vmul.f32 %v1340_v43, %v149_v40 }
  0x24   : > { %v164_v53 = vld [vmem:[#allocation3 + $0xa8] sm:$0xff]  ;;  %v1341_v54 = vld [vmem:[#allocation2 + $0x3] ss:$0 sm:$0xff]  ;;  %v166_v60 = vld [vmem:[#allocation3 + $0xb8] sm:$0xff]  ;;  %v1726_v18 = vmul.f32 %v1340_v43, %v150_v41  ;;  %v1728_v19 = vmul.f32 %v1340_v43, %v151_v42 }
  0x25   : > { %v165_v59 = vld [vmem:[#allocation3 + $0xb0] sm:$0xff]  ;;  %v176_v61 = vld [vmem:[#allocation3 + $0xc0] sm:$0xff]  ;;  %v177_v62 = vld [vmem:[#allocation3 + $0xc8] sm:$0xff]  ;;  %v1730_v22 = vmul.f32 %v1341_v54, %v161_v46  ;;  %v1732_v23 = vmul.f32 %v1341_v54, %v162_v47  ;;  %v1734_v24 = vmul.f32 %v1341_v54, %v163_v48  ;;  %v1736_v25 = vmul.f32 %v1341_v54, %v164_v53 }
  0x26   : > { %v178_v13 = vld [vmem:[#allocation3 + $0xd0] sm:$0xff]  ;;  %v179_v14 = vld [vmem:[#allocation3 + $0xd8] sm:$0xff]  ;;  %v180_v15 = vld [vmem:[#allocation3 + $0xe0] sm:$0xff]  ;;  %v1738_v35 = vmul.f32 %v1341_v54, %v165_v59  ;;  %v1740_v36 = vmul.f32 %v1341_v54, %v166_v60 }
  0x27   : > { %v181_v20 = vld [vmem:[#allocation3 + $0xe8] sm:$0xff]  ;;  %v1342_v21 = vld [vmem:[#allocation2 + $0x4] ss:$0 sm:$0xff]  ;;  %v198_v27 = vld [vmem:[#allocation3 + $0xf8] sm:$0xff] }
  0x28   : > { %v197_v26 = vld [vmem:[#allocation3 + $0xf0] sm:$0xff]  ;;  %v183_v28 = vmul.f32 %v1342_v21, %v176_v61  ;;  %v184_v29 = vmul.f32 %v1342_v21, %v177_v62  ;;  %v185_v30 = vmul.f32 %v1342_v21, %v178_v13  ;;  %v186_v31 = vmul.f32 %v1342_v21, %v179_v14  ;;  %v199_v32 = vld [vmem:[#allocation3 + $0x100] sm:$0xff]  ;;  %v200_v33 = vld [vmem:[#allocation3 + $0x108] sm:$0xff] }
  0x29   : > { %v1343_v34 = vld [vmem:[#allocation2 + $0x5] ss:$0 sm:$0xff]  ;;  %v187_v37 = vmul.f32 %v1342_v21, %v180_v15  ;;  %v188_v38 = vmul.f32 %v1342_v21, %v181_v20  ;;  %v202_v40 = vld [vmem:[#allocation3 + $0x118] sm:$0xff]  ;;  %v218_v47 = vld [vmem:[#allocation3 + $0x120] sm:$0xff] }
  0x2a   : > { %v201_v39 = vld [vmem:[#allocation3 + $0x110] sm:$0xff]  ;;  %v1742_v41 = vadd.f32 %v183_v28, %v123_v44  ;;  %v1744_v42 = vadd.f32 %v184_v29, %v124_v45  ;;  %v1746_v43 = vadd.f32 %v185_v30, %v125_v49  ;;  %v1748_v46 = vadd.f32 %v186_v31, %v126_v50  ;;  %v219_v48 = vld [vmem:[#allocation3 + $0x128] sm:$0xff]  ;;  %v221_v45 = vld [vmem:[#allocation3 + $0x138] sm:$0xff] }
  0x2b   : > { %v1750_v53 = vadd.f32 %v187_v37, %v127_v51  ;;  %v1752_v59 = vadd.f32 %v188_v38, %v128_v52  ;;  %v204_v54 = vmul.f32 %v1343_v34, %v197_v26  ;;  %v205_v60 = vmul.f32 %v1343_v34, %v198_v27  ;;  %v220_v61 = vld [vmem:[#allocation3 + $0x130] sm:$0xff]  ;;  %v222_v20 = vld [vmem:[#allocation3 + $0x140] sm:$0xff]  ;;  %v223_v49 = vld [vmem:[#allocation3 + $0x148] sm:$0xff] }
  0x2c   : > { %v1344_v62 = vld [vmem:[#allocation2 + $0x6] ss:$0 sm:$0xff]  ;;  %v206_v13 = vmul.f32 %v1343_v34, %v199_v32  ;;  %v207_v14 = vmul.f32 %v1343_v34, %v200_v33  ;;  %v208_v44 = vmul.f32 %v1343_v34, %v201_v39  ;;  %v209_v15 = vmul.f32 %v1343_v34, %v202_v40  ;;  %v240_v52 = vld [vmem:[#allocation3 + $0x158] sm:$0xff]  ;;  %v241_v32 = vld [vmem:[#allocation3 + $0x160] sm:$0xff] }
  0x2d   : > { %v1754_v21 = vadd.f32 %v204_v54, %v138_v55  ;;  %v1756_v50 = vadd.f32 %v205_v60, %v139_v56  ;;  %v225_v28 = vmul.f32 %v1344_v62, %v218_v47  ;;  %v226_v51 = vmul.f32 %v1344_v62, %v219_v48  ;;  %v239_v29 = vld [vmem:[#allocation3 + $0x150] sm:$0xff]  ;;  %v242_v38 = vld [vmem:[#allocation3 + $0x168] sm:$0xff]  ;;  %v244_v40 = vld [vmem:[#allocation3 + $0x178] sm:$0xff] }
  0x2e   : > { %v1759_v26 = vadd.f32 %v206_v13, %v1714_v57  ;;  %v1762_v27 = vadd.f32 %v207_v14, %v1716_v58  ;;  %v1764_v30 = vadd.f32 %v208_v44, %v142_v63  ;;  %v1766_v31 = vadd.f32 %v209_v15, %v143_v0  ;;  %v1345_v33 = vld [vmem:[#allocation2 + $0x7] ss:$0 sm:$0xff]  ;;  %v260_v48 = vld [vmem:[#allocation3 + $0x180] sm:$0xff]  ;;  %v261_v0 = vld [vmem:[#allocation3 + $0x188] sm:$0xff] }
  0x2f   : > { %v227_v55 = vmul.f32 %v1344_v62, %v220_v61  ;;  %v228_v34 = vmul.f32 %v1344_v62, %v221_v45  ;;  %v229_v56 = vmul.f32 %v1344_v62, %v222_v20  ;;  %v230_v37 = vmul.f32 %v1344_v62, %v223_v49  ;;  %v243_v39 = vld [vmem:[#allocation3 + $0x170] sm:$0xff]  ;;  %v1346_v13 = vld [vmem:[#allocation2 + $0x8] ss:$0 sm:$0xff]  ;;  %v264_v20 = vld [vmem:[#allocation3 + $0x1a0] sm:$0xff] }
  0x30   : > { %v1769_v47 = vadd.f32 %v225_v28, %v1718_v11  ;;  %v1772_v57 = vadd.f32 %v226_v51, %v1720_v12  ;;  %v246_v58 = vmul.f32 %v1345_v33, %v239_v29  ;;  %v247_v63 = vmul.f32 %v1345_v33, %v240_v52  ;;  %v262_v11 = vld [vmem:[#allocation3 + $0x190] sm:$0xff]  ;;  %v263_v45 = vld [vmem:[#allocation3 + $0x198] sm:$0xff]  ;;  %v265_v49 = vld [vmem:[#allocation3 + $0x1a8] sm:$0xff] }
  0x31   : > { %v1775_v54 = vadd.f32 %v227_v55, %v1722_v16  ;;  %v1778_v60 = vadd.f32 %v228_v34, %v1724_v17  ;;  %v1781_v61 = vadd.f32 %v229_v56, %v1726_v18  ;;  %v1784_v62 = vadd.f32 %v230_v37, %v1728_v19  ;;  %v281_v51 = vld [vmem:[#allocation3 + $0x1b0] sm:$0xff]  ;;  %v282_v19 = vld [vmem:[#allocation3 + $0x1b8] sm:$0xff] }
  0x32   : > { %v248_v12 = vmul.f32 %v1345_v33, %v241_v32  ;;  %v249_v14 = vmul.f32 %v1345_v33, %v242_v38  ;;  %v250_v44 = vmul.f32 %v1345_v33, %v243_v39  ;;  %v251_v15 = vmul.f32 %v1345_v33, %v244_v40  ;;  %v1347_v55 = vld [vmem:[#allocation2 + $0x9] ss:$0 sm:$0xff]  ;;  %v284_v38 = vld [vmem:[#allocation3 + $0x1c8] sm:$0xff]  ;;  %v285_v39 = vld [vmem:[#allocation3 + $0x1d0] sm:$0xff] }
  0x33   : > { %v1787_v16 = vadd.f32 %v246_v58, %v1730_v22  ;;  %v1790_v17 = vadd.f32 %v247_v63, %v1732_v23  ;;  %v267_v18 = vmul.f32 %v1346_v13, %v260_v48  ;;  %v268_v28 = vmul.f32 %v1346_v13, %v261_v0  ;;  %v283_v22 = vld [vmem:[#allocation3 + $0x1c0] sm:$0xff]  ;;  %v286_v40 = vld [vmem:[#allocation3 + $0x1d8] sm:$0xff] }
  0x34   : > { %v1793_v29 = vadd.f32 %v248_v12, %v1734_v24  ;;  %v1796_v52 = vadd.f32 %v249_v14, %v1736_v25  ;;  %v1799_v32 = vadd.f32 %v250_v44, %v1738_v35  ;;  %v1802_v33 = vadd.f32 %v251_v15, %v1740_v36  ;;  %v302_v63 = vld [vmem:[#allocation3 + $0x1e0] sm:$0xff]  ;;  %v303_v36 = vld [vmem:[#allocation3 + $0x1e8] sm:$0xff]  ;;  %v1348_v12 = vld [vmem:[#allocation2 + $0xa] ss:$0 sm:$0xff] }
  0x35   : > { %v269_v23 = vmul.f32 %v1346_v13, %v262_v11  ;;  %v270_v34 = vmul.f32 %v1346_v13, %v263_v45  ;;  %v271_v56 = vmul.f32 %v1346_v13, %v264_v20  ;;  %v272_v37 = vmul.f32 %v1346_v13, %v265_v49  ;;  %v305_v45 = vld [vmem:[#allocation3 + $0x1f8] sm:$0xff]  ;;  %v306_v20 = vld [vmem:[#allocation3 + $0x200] sm:$0xff]  ;;  %v307_v49 = vld [vmem:[#allocation3 + $0x208] sm:$0xff] }
  0x36   : > { %v1805_v24 = vadd.f32 %v267_v18, %v1742_v41  ;;  %v1808_v25 = vadd.f32 %v268_v28, %v1744_v42  ;;  %v288_v35 = vmul.f32 %v1347_v55, %v281_v51  ;;  %v289_v58 = vmul.f32 %v1347_v55, %v282_v19  ;;  %v304_v41 = vld [vmem:[#allocation3 + $0x1f0] sm:$0xff] }
  0x37   : > { %v1811_v48 = vadd.f32 %v269_v23, %v1746_v43  ;;  %v1814_v0 = vadd.f32 %v270_v34, %v1748_v46  ;;  %v1817_v11 = vadd.f32 %v271_v56, %v1750_v53  ;;  %v1820_v13 = vadd.f32 %v272_v37, %v1752_v59  ;;  %v323_v28 = vld [vmem:[#allocation3 + $0x210] sm:$0xff]  ;;  %v324_v59 = vld [vmem:[#allocation3 + $0x218] sm:$0xff]  ;;  %v326_v23 = vld [vmem:[#allocation3 + $0x228] sm:$0xff] }
  0x38   : > { %v290_v42 = vmul.f32 %v1347_v55, %v283_v22  ;;  %v291_v14 = vmul.f32 %v1347_v55, %v284_v38  ;;  %v292_v44 = vmul.f32 %v1347_v55, %v285_v39  ;;  %v293_v15 = vmul.f32 %v1347_v55, %v286_v40  ;;  %v327_v39 = vld [vmem:[#allocation3 + $0x230] sm:$0xff]  ;;  %v328_v40 = vld [vmem:[#allocation3 + $0x238] sm:$0xff] }
  0x39   : > { %v1823_v43 = vadd.f32 %v288_v35, %v1754_v21  ;;  %v1826_v46 = vadd.f32 %v289_v58, %v1756_v50  ;;  %v309_v53 = vmul.f32 %v1348_v12, %v302_v63  ;;  %v310_v18 = vmul.f32 %v1348_v12, %v303_v36  ;;  %v325_v21 = vld [vmem:[#allocation3 + $0x220] sm:$0xff]  ;;  %v1349_v50 = vld [vmem:[#allocation2 + $0xb] ss:$0 sm:$0xff] }
  0x3a   : > { %v1829_v51 = vadd.f32 %v290_v42, %v1759_v26  ;;  %v1832_v19 = vadd.f32 %v291_v14, %v1762_v27  ;;  %v1835_v22 = vadd.f32 %v292_v44, %v1764_v30  ;;  %v1838_v55 = vadd.f32 %v293_v15, %v1766_v31  ;;  %v344_v58 = vld [vmem:[#allocation3 + $0x240] sm:$0xff]  ;;  %v345_v31 = vld [vmem:[#allocation3 + $0x248] sm:$0xff]  ;;  %v347_v42 = vld [vmem:[#allocation3 + $0x258] sm:$0xff] }
  0x3b   : > { %v311_v34 = vmul.f32 %v1348_v12, %v304_v41  ;;  %v312_v56 = vmul.f32 %v1348_v12, %v305_v45  ;;  %v313_v37 = vmul.f32 %v1348_v12, %v306_v20  ;;  %v314_v38 = vmul.f32 %v1348_v12, %v307_v49  ;;  %v348_v20 = vld [vmem:[#allocation3 + $0x260] sm:$0xff]  ;;  %v349_v49 = vld [vmem:[#allocation3 + $0x268] sm:$0xff] }
  0x3c   : > { %v1841_v26 = vadd.f32 %v309_v53, %v1769_v47  ;;  %v1844_v27 = vadd.f32 %v310_v18, %v1772_v57  ;;  %v330_v30 = vmul.f32 %v1349_v50, %v323_v28  ;;  %v331_v35 = vmul.f32 %v1349_v50, %v324_v59  ;;  %v346_v47 = vld [vmem:[#allocation3 + $0x250] sm:$0xff]  ;;  %v1350_v57 = vld [vmem:[#allocation2 + $0xc] ss:$0 sm:$0xff] }
  0x3d   : > { %v1847_v63 = vadd.f32 %v311_v34, %v1775_v54  ;;  %v1850_v36 = vadd.f32 %v312_v56, %v1778_v60  ;;  %v1853_v41 = vadd.f32 %v313_v37, %v1781_v61  ;;  %v1856_v12 = vadd.f32 %v314_v38, %v1784_v62  ;;  %v365_v18 = vld [vmem:[#allocation3 + $0x270] sm:$0xff]  ;;  %v366_v62 = vld [vmem:[#allocation3 + $0x278] sm:$0xff] }
  0x3e   : > { %v332_v14 = vmul.f32 %v1349_v50, %v325_v21  ;;  %v333_v44 = vmul.f32 %v1349_v50, %v326_v23  ;;  %v334_v15 = vmul.f32 %v1349_v50, %v327_v39  ;;  %v335_v45 = vmul.f32 %v1349_v50, %v328_v40  ;;  %v368_v50 = vld [vmem:[#allocation3 + $0x288] sm:$0xff]  ;;  %v369_v39 = vld [vmem:[#allocation3 + $0x290] sm:$0xff]  ;;  %v370_v40 = vld [vmem:[#allocation3 + $0x298] sm:$0xff] }
  0x3f   : > { %v1859_v54 = vadd.f32 %v330_v30, %v1787_v16  ;;  %v1862_v60 = vadd.f32 %v331_v35, %v1790_v17  ;;  %v351_v61 = vmul.f32 %v1350_v57, %v344_v58  ;;  %v352_v53 = vmul.f32 %v1350_v57, %v345_v31  ;;  %v367_v16 = vld [vmem:[#allocation3 + $0x280] sm:$0xff]  ;;  %v1351_v17 = vld [vmem:[#allocation2 + $0xd] ss:$0 sm:$0xff] }
  0x40   : > { %v1865_v28 = vadd.f32 %v332_v14, %v1793_v29  ;;  %v1868_v59 = vadd.f32 %v333_v44, %v1796_v52  ;;  %v1871_v21 = vadd.f32 %v334_v15, %v1799_v32  ;;  %v1874_v23 = vadd.f32 %v335_v45, %v1802_v33  ;;  %v386_v35 = vld [vmem:[#allocation3 + $0x2a0] sm:$0xff]  ;;  %v387_v33 = vld [vmem:[#allocation3 + $0x2a8] sm:$0xff]  ;;  %v389_v45 = vld [vmem:[#allocation3 + $0x2b8] sm:$0xff] }
  0x41   : > { %v353_v34 = vmul.f32 %v1350_v57, %v346_v47  ;;  %v354_v56 = vmul.f32 %v1350_v57, %v347_v42  ;;  %v355_v37 = vmul.f32 %v1350_v57, %v348_v20  ;;  %v356_v38 = vmul.f32 %v1350_v57, %v349_v49  ;;  %v1352_v57 = vld [vmem:[#allocation2 + $0xe] ss:$0 sm:$0xff]  ;;  %v390_v20 = vld [vmem:[#allocation3 + $0x2c0] sm:$0xff]  ;;  %v391_v49 = vld [vmem:[#allocation3 + $0x2c8] sm:$0xff] }
  0x42   : > { %v1877_v29 = vadd.f32 %v351_v61, %v1805_v24  ;;  %v1880_v52 = vadd.f32 %v352_v53, %v1808_v25  ;;  %v372_v32 = vmul.f32 %v1351_v17, %v365_v18  ;;  %v373_v30 = vmul.f32 %v1351_v17, %v366_v62  ;;  %v388_v24 = vld [vmem:[#allocation3 + $0x2b0] sm:$0xff] }
  0x43   : > { %v1883_v58 = vadd.f32 %v353_v34, %v1811_v48  ;;  %v1886_v31 = vadd.f32 %v354_v56, %v1814_v0  ;;  %v1889_v47 = vadd.f32 %v355_v37, %v1817_v11  ;;  %v1892_v42 = vadd.f32 %v356_v38, %v1820_v13  ;;  %v407_v53 = vld [vmem:[#allocation3 + $0x2d0] sm:$0xff]  ;;  %v408_v13 = vld [vmem:[#allocation3 + $0x2d8] sm:$0xff]  ;;  %v410_v38 = vld [vmem:[#allocation3 + $0x2e8] sm:$0xff] }
  0x44   : > { %v374_v25 = vmul.f32 %v1351_v17, %v367_v16  ;;  %v375_v14 = vmul.f32 %v1351_v17, %v368_v50  ;;  %v376_v44 = vmul.f32 %v1351_v17, %v369_v39  ;;  %v377_v15 = vmul.f32 %v1351_v17, %v370_v40  ;;  %v1353_v17 = vld [vmem:[#allocation2 + $0xf] ss:$0 sm:$0xff]  ;;  %v411_v39 = vld [vmem:[#allocation3 + $0x2f0] sm:$0xff] }
  0x45   : > { %v1895_v48 = vadd.f32 %v372_v32, %v1823_v43  ;;  %v1898_v0 = vadd.f32 %v373_v30, %v1826_v46  ;;  %v393_v11 = vmul.f32 %v1352_v57, %v386_v35  ;;  %v394_v61 = vmul.f32 %v1352_v57, %v387_v33  ;;  %v409_v43 = vld [vmem:[#allocation3 + $0x2e0] sm:$0xff]  ;;  %v412_v40 = vld [vmem:[#allocation3 + $0x2f8] sm:$0xff] }
  0x46   : > { %v1901_v18 = vadd.f32 %v374_v25, %v1829_v51  ;;  %v1904_v62 = vadd.f32 %v375_v14, %v1832_v19  ;;  %v1907_v16 = vadd.f32 %v376_v44, %v1835_v22  ;;  %v1910_v50 = vadd.f32 %v377_v15, %v1838_v55  ;;  %v428_v30 = vld [vmem:[#allocation3 + $0x300] sm:$0xff]  ;;  %v429_v55 = vld [vmem:[#allocation3 + $0x308] sm:$0xff] }
  0x47   : > { %v395_v46 = vmul.f32 %v1352_v57, %v388_v24  ;;  %v396_v34 = vmul.f32 %v1352_v57, %v389_v45  ;;  %v397_v56 = vmul.f32 %v1352_v57, %v390_v20  ;;  %v398_v37 = vmul.f32 %v1352_v57, %v391_v49  ;;  %v1354_v25 = vld [vmem:[#allocation2 + $0x10] ss:$0 sm:$0xff]  ;;  %v431_v45 = vld [vmem:[#allocation3 + $0x318] sm:$0xff]  ;;  %v433_v49 = vld [vmem:[#allocation3 + $0x328] sm:$0xff] }
  0x48   : > { %v1913_v51 = vadd.f32 %v393_v11, %v1841_v26  ;;  %v1916_v19 = vadd.f32 %v394_v61, %v1844_v27  ;;  %v414_v22 = vmul.f32 %v1353_v17, %v407_v53  ;;  %v415_v32 = vmul.f32 %v1353_v17, %v408_v13  ;;  %v430_v26 = vld [vmem:[#allocation3 + $0x310] sm:$0xff]  ;;  %v432_v20 = vld [vmem:[#allocation3 + $0x320] sm:$0xff] }
  0x49   : > { %v1919_v35 = vadd.f32 %v395_v46, %v1847_v63  ;;  %v1922_v33 = vadd.f32 %v396_v34, %v1850_v36  ;;  %v1925_v24 = vadd.f32 %v397_v56, %v1853_v41  ;;  %v1928_v57 = vadd.f32 %v398_v37, %v1856_v12  ;;  %v449_v61 = vld [vmem:[#allocation3 + $0x330] sm:$0xff]  ;;  %v450_v12 = vld [vmem:[#allocation3 + $0x338] sm:$0xff]  ;;  %v1355_v46 = vld [vmem:[#allocation2 + $0x11] ss:$0 sm:$0xff] }
  0x4a   : > { %v416_v27 = vmul.f32 %v1353_v17, %v409_v43  ;;  %v417_v14 = vmul.f32 %v1353_v17, %v410_v38  ;;  %v418_v44 = vmul.f32 %v1353_v17, %v411_v39  ;;  %v419_v15 = vmul.f32 %v1353_v17, %v412_v40  ;;  %v452_v38 = vld [vmem:[#allocation3 + $0x348] sm:$0xff]  ;;  %v453_v39 = vld [vmem:[#allocation3 + $0x350] sm:$0xff]  ;;  %v454_v40 = vld [vmem:[#allocation3 + $0x358] sm:$0xff] }
  0x4b   : > { %v1931_v63 = vadd.f32 %v414_v22, %v1859_v54  ;;  %v1934_v36 = vadd.f32 %v415_v32, %v1862_v60  ;;  %v435_v41 = vmul.f32 %v1354_v25, %v428_v30  ;;  %v436_v11 = vmul.f32 %v1354_v25, %v429_v55  ;;  %v451_v54 = vld [vmem:[#allocation3 + $0x340] sm:$0xff] }
  0x4c   : > { %v1937_v53 = vadd.f32 %v416_v27, %v1865_v28  ;;  %v1940_v13 = vadd.f32 %v417_v14, %v1868_v59  ;;  %v1943_v43 = vadd.f32 %v418_v44, %v1871_v21  ;;  %v1946_v17 = vadd.f32 %v419_v15, %v1874_v23  ;;  %v470_v32 = vld [vmem:[#allocation3 + $0x360] sm:$0xff]  ;;  %v471_v23 = vld [vmem:[#allocation3 + $0x368] sm:$0xff] }
  0x4d   : > { %v437_v60 = vmul.f32 %v1354_v25, %v430_v26  ;;  %v438_v34 = vmul.f32 %v1354_v25, %v431_v45  ;;  %v439_v56 = vmul.f32 %v1354_v25, %v432_v20  ;;  %v440_v37 = vmul.f32 %v1354_v25, %v433_v49  ;;  %v1356_v27 = vld [vmem:[#allocation2 + $0x12] ss:$0 sm:$0xff]  ;;  %v473_v45 = vld [vmem:[#allocation3 + $0x378] sm:$0xff]  ;;  %v475_v49 = vld [vmem:[#allocation3 + $0x388] sm:$0xff] }
  0x4e   : > { %v1949_v28 = vadd.f32 %v435_v41, %v1877_v29  ;;  %v1952_v59 = vadd.f32 %v436_v11, %v1880_v52  ;;  %v456_v21 = vmul.f32 %v1355_v46, %v449_v61  ;;  %v457_v22 = vmul.f32 %v1355_v46, %v450_v12  ;;  %v472_v29 = vld [vmem:[#allocation3 + $0x370] sm:$0xff]  ;;  %v474_v20 = vld [vmem:[#allocation3 + $0x380] sm:$0xff] }
  0x4f   : > { %v1955_v30 = vadd.f32 %v437_v60, %v1883_v58  ;;  %v1958_v55 = vadd.f32 %v438_v34, %v1886_v31  ;;  %v1961_v26 = vadd.f32 %v439_v56, %v1889_v47  ;;  %v1964_v25 = vadd.f32 %v440_v37, %v1892_v42  ;;  %v491_v11 = vld [vmem:[#allocation3 + $0x390] sm:$0xff]  ;;  %v492_v42 = vld [vmem:[#allocation3 + $0x398] sm:$0xff]  ;;  %v494_v60 = vld [vmem:[#allocation3 + $0x3a8] sm:$0xff] }
  0x50   : > { %v458_v52 = vmul.f32 %v1355_v46, %v451_v54  ;;  %v459_v14 = vmul.f32 %v1355_v46, %v452_v38  ;;  %v460_v44 = vmul.f32 %v1355_v46, %v453_v39  ;;  %v461_v15 = vmul.f32 %v1355_v46, %v454_v40  ;;  %v495_v39 = vld [vmem:[#allocation3 + $0x3b0] sm:$0xff]  ;;  %v496_v40 = vld [vmem:[#allocation3 + $0x3b8] sm:$0xff] }
  0x51   : > { %v1967_v58 = vadd.f32 %v456_v21, %v1895_v48  ;;  %v1970_v31 = vadd.f32 %v457_v22, %v1898_v0  ;;  %v477_v47 = vmul.f32 %v1356_v27, %v470_v32  ;;  %v478_v41 = vmul.f32 %v1356_v27, %v471_v23  ;;  %v493_v48 = vld [vmem:[#allocation3 + $0x3a0] sm:$0xff] }
  0x52   : > { %v1973_v61 = vadd.f32 %v458_v52, %v1901_v18  ;;  %v1976_v12 = vadd.f32 %v459_v14, %v1904_v62  ;;  %v1979_v54 = vadd.f32 %v460_v44, %v1907_v16  ;;  %v1982_v46 = vadd.f32 %v461_v15, %v1910_v50  ;;  %v1357_v0 = vld [vmem:[#allocation2 + $0x13] ss:$0 sm:$0xff]  ;;  %v513_v50 = vld [vmem:[#allocation3 + $0x3c8] sm:$0xff]  ;;  %v515_v52 = vld [vmem:[#allocation3 + $0x3d8] sm:$0xff] }
  0x53   : > { %v479_v34 = vmul.f32 %v1356_v27, %v472_v29  ;;  %v480_v56 = vmul.f32 %v1356_v27, %v473_v45  ;;  %v481_v37 = vmul.f32 %v1356_v27, %v474_v20  ;;  %v482_v38 = vmul.f32 %v1356_v27, %v475_v49  ;;  %v512_v22 = vld [vmem:[#allocation3 + $0x3c0] sm:$0xff]  ;;  %v517_v49 = vld [vmem:[#allocation3 + $0x3e8] sm:$0xff] }
  0x54   : > { %v1985_v18 = vadd.f32 %v477_v47, %v1913_v51  ;;  %v1988_v62 = vadd.f32 %v478_v41, %v1916_v19  ;;  %v498_v16 = vmul.f32 %v1357_v0, %v491_v11  ;;  %v499_v21 = vmul.f32 %v1357_v0, %v492_v42  ;;  %v514_v51 = vld [vmem:[#allocation3 + $0x3d0] sm:$0xff]  ;;  %v1358_v19 = vld [vmem:[#allocation2 + $0x14] ss:$0 sm:$0xff] }
  0x55   : > { %v1991_v32 = vadd.f32 %v479_v34, %v1919_v35  ;;  %v1994_v23 = vadd.f32 %v480_v56, %v1922_v33  ;;  %v1997_v29 = vadd.f32 %v481_v37, %v1925_v24  ;;  %v2000_v27 = vadd.f32 %v482_v38, %v1928_v57  ;;  %v516_v20 = vld [vmem:[#allocation3 + $0x3e0] sm:$0xff]  ;;  %v533_v41 = vld [vmem:[#allocation3 + $0x3f0] sm:$0xff]  ;;  %v534_v57 = vld [vmem:[#allocation3 + $0x3f8] sm:$0xff] }
  0x56   : > { %v500_v14 = vmul.f32 %v1357_v0, %v493_v48  ;;  %v501_v44 = vmul.f32 %v1357_v0, %v494_v60  ;;  %v502_v15 = vmul.f32 %v1357_v0, %v495_v39  ;;  %v503_v45 = vmul.f32 %v1357_v0, %v496_v40  ;;  %v536_v0 = vld [vmem:[#allocation3 + $0x408] sm:$0xff]  ;;  %v537_v39 = vld [vmem:[#allocation3 + $0x410] sm:$0xff]  ;;  %v538_v40 = vld [vmem:[#allocation3 + $0x418] sm:$0xff] }
  0x57   : > { %v2003_v35 = vadd.f32 %v498_v16, %v1931_v63  ;;  %v2006_v33 = vadd.f32 %v499_v21, %v1934_v36  ;;  %v519_v24 = vmul.f32 %v1358_v19, %v512_v22  ;;  %v520_v47 = vmul.f32 %v1358_v19, %v513_v50  ;;  %v535_v63 = vld [vmem:[#allocation3 + $0x400] sm:$0xff] }
  0x58   : > { %v2009_v11 = vadd.f32 %v500_v14, %v1937_v53  ;;  %v2012_v42 = vadd.f32 %v501_v44, %v1940_v13  ;;  %v2015_v48 = vadd.f32 %v502_v15, %v1943_v43  ;;  %v2018_v60 = vadd.f32 %v503_v45, %v1946_v17  ;;  %v1359_v36 = vld [vmem:[#allocation2 + $0x15] ss:$0 sm:$0xff]  ;;  %v555_v17 = vld [vmem:[#allocation3 + $0x428] sm:$0xff]  ;;  %v557_v45 = vld [vmem:[#allocation3 + $0x438] sm:$0xff] }
  0x59   : > { %v521_v34 = vmul.f32 %v1358_v19, %v514_v51  ;;  %v522_v56 = vmul.f32 %v1358_v19, %v515_v52  ;;  %v523_v37 = vmul.f32 %v1358_v19, %v516_v20  ;;  %v524_v38 = vmul.f32 %v1358_v19, %v517_v49  ;;  %v554_v21 = vld [vmem:[#allocation3 + $0x420] sm:$0xff]  ;;  %v559_v49 = vld [vmem:[#allocation3 + $0x448] sm:$0xff] }
  0x5a   : > { %v2021_v53 = vadd.f32 %v519_v24, %v1949_v28  ;;  %v2024_v13 = vadd.f32 %v520_v47, %v1952_v59  ;;  %v540_v43 = vmul.f32 %v1359_v36, %v533_v41  ;;  %v541_v16 = vmul.f32 %v1359_v36, %v534_v57  ;;  %v556_v28 = vld [vmem:[#allocation3 + $0x430] sm:$0xff]  ;;  %v1360_v19 = vld [vmem:[#allocation2 + $0x16] ss:$0 sm:$0xff] }
  0x5b   : > { %v2027_v22 = vadd.f32 %v521_v34, %v1955_v30  ;;  %v2030_v50 = vadd.f32 %v522_v56, %v1958_v55  ;;  %v2033_v51 = vadd.f32 %v523_v37, %v1961_v26  ;;  %v2036_v52 = vadd.f32 %v524_v38, %v1964_v25  ;;  %v558_v20 = vld [vmem:[#allocation3 + $0x440] sm:$0xff]  ;;  %v575_v47 = vld [vmem:[#allocation3 + $0x450] sm:$0xff]  ;;  %v576_v25 = vld [vmem:[#allocation3 + $0x458] sm:$0xff] }
  0x5c   : > { %v542_v59 = vmul.f32 %v1359_v36, %v535_v63  ;;  %v543_v14 = vmul.f32 %v1359_v36, %v536_v0  ;;  %v544_v44 = vmul.f32 %v1359_v36, %v537_v39  ;;  %v545_v15 = vmul.f32 %v1359_v36, %v538_v40  ;;  %v1361_v36 = vld [vmem:[#allocation2 + $0x17] ss:$0 sm:$0xff]  ;;  %v578_v38 = vld [vmem:[#allocation3 + $0x468] sm:$0xff]  ;;  %v579_v39 = vld [vmem:[#allocation3 + $0x470] sm:$0xff] }
  0x5d   : > { %v2039_v30 = vadd.f32 %v540_v43, %v1967_v58  ;;  %v2042_v55 = vadd.f32 %v541_v16, %v1970_v31  ;;  %v561_v26 = vmul.f32 %v1360_v19, %v554_v21  ;;  %v562_v24 = vmul.f32 %v1360_v19, %v555_v17  ;;  %v577_v58 = vld [vmem:[#allocation3 + $0x460] sm:$0xff]  ;;  %v580_v40 = vld [vmem:[#allocation3 + $0x478] sm:$0xff] }
  0x5e   : > { %v2045_v41 = vadd.f32 %v542_v59, %v1973_v61  ;;  %v2048_v57 = vadd.f32 %v543_v14, %v1976_v12  ;;  %v2051_v63 = vadd.f32 %v544_v44, %v1979_v54  ;;  %v2054_v0 = vadd.f32 %v545_v15, %v1982_v46  ;;  %v596_v16 = vld [vmem:[#allocation3 + $0x480] sm:$0xff]  ;;  %v597_v46 = vld [vmem:[#allocation3 + $0x488] sm:$0xff] }
  0x5f   : > { %v563_v31 = vmul.f32 %v1360_v19, %v556_v28  ;;  %v564_v34 = vmul.f32 %v1360_v19, %v557_v45  ;;  %v565_v56 = vmul.f32 %v1360_v19, %v558_v20  ;;  %v566_v37 = vmul.f32 %v1360_v19, %v559_v49  ;;  %v1362_v59 = vld [vmem:[#allocation2 + $0x18] ss:$0 sm:$0xff]  ;;  %v599_v45 = vld [vmem:[#allocation3 + $0x498] sm:$0xff]  ;;  %v600_v20 = vld [vmem:[#allocation3 + $0x4a0] sm:$0xff] }
  0x60   : > { %v2057_v61 = vadd.f32 %v561_v26, %v1985_v18  ;;  %v2060_v12 = vadd.f32 %v562_v24, %v1988_v62  ;;  %v582_v54 = vmul.f32 %v1361_v36, %v575_v47  ;;  %v583_v43 = vmul.f32 %v1361_v36, %v576_v25  ;;  %v598_v18 = vld [vmem:[#allocation3 + $0x490] sm:$0xff]  ;;  %v601_v49 = vld [vmem:[#allocation3 + $0x4a8] sm:$0xff] }
  0x61   : > { %v2063_v21 = vadd.f32 %v563_v31, %v1991_v32  ;;  %v2066_v17 = vadd.f32 %v564_v34, %v1994_v23  ;;  %v2069_v28 = vadd.f32 %v565_v56, %v1997_v29  ;;  %v2072_v19 = vadd.f32 %v566_v37, %v2000_v27  ;;  %v617_v24 = vld [vmem:[#allocation3 + $0x4b0] sm:$0xff]  ;;  %v618_v27 = vld [vmem:[#allocation3 + $0x4b8] sm:$0xff]  ;;  %v1363_v31 = vld [vmem:[#allocation2 + $0x19] ss:$0 sm:$0xff] }
  0x62   : > { %v584_v62 = vmul.f32 %v1361_v36, %v577_v58  ;;  %v585_v14 = vmul.f32 %v1361_v36, %v578_v38  ;;  %v586_v44 = vmul.f32 %v1361_v36, %v579_v39  ;;  %v587_v15 = vmul.f32 %v1361_v36, %v580_v40  ;;  %v620_v38 = vld [vmem:[#allocation3 + $0x4c8] sm:$0xff]  ;;  %v621_v39 = vld [vmem:[#allocation3 + $0x4d0] sm:$0xff]  ;;  %v622_v40 = vld [vmem:[#allocation3 + $0x4d8] sm:$0xff] }
  0x63   : > { %v2075_v32 = vadd.f32 %v582_v54, %v2003_v35  ;;  %v2078_v23 = vadd.f32 %v583_v43, %v2006_v33  ;;  %v603_v29 = vmul.f32 %v1362_v59, %v596_v16  ;;  %v604_v26 = vmul.f32 %v1362_v59, %v597_v46  ;;  %v619_v35 = vld [vmem:[#allocation3 + $0x4c0] sm:$0xff] }
  0x64   : > { %v2081_v47 = vadd.f32 %v584_v62, %v2009_v11  ;;  %v2084_v25 = vadd.f32 %v585_v14, %v2012_v42  ;;  %v2087_v58 = vadd.f32 %v586_v44, %v2015_v48  ;;  %v2090_v36 = vadd.f32 %v587_v15, %v2018_v60  ;;  %v638_v43 = vld [vmem:[#allocation3 + $0x4e0] sm:$0xff]  ;;  %v639_v60 = vld [vmem:[#allocation3 + $0x4e8] sm:$0xff] }
  0x65   : > { %v605_v33 = vmul.f32 %v1362_v59, %v598_v18  ;;  %v606_v34 = vmul.f32 %v1362_v59, %v599_v45  ;;  %v607_v56 = vmul.f32 %v1362_v59, %v600_v20  ;;  %v608_v37 = vmul.f32 %v1362_v59, %v601_v49  ;;  %v1364_v62 = vld [vmem:[#allocation2 + $0x1a] ss:$0 sm:$0xff]  ;;  %v641_v45 = vld [vmem:[#allocation3 + $0x4f8] sm:$0xff]  ;;  %v642_v20 = vld [vmem:[#allocation3 + $0x500] sm:$0xff] }
  0x66   : > { %v2093_v11 = vadd.f32 %v603_v29, %v2021_v53  ;;  %v2096_v42 = vadd.f32 %v604_v26, %v2024_v13  ;;  %v624_v48 = vmul.f32 %v1363_v31, %v617_v24  ;;  %v625_v54 = vmul.f32 %v1363_v31, %v618_v27  ;;  %v640_v53 = vld [vmem:[#allocation3 + $0x4f0] sm:$0xff]  ;;  %v643_v49 = vld [vmem:[#allocation3 + $0x508] sm:$0xff] }
  0x67   : > { %v2099_v16 = vadd.f32 %v605_v33, %v2027_v22  ;;  %v2102_v46 = vadd.f32 %v606_v34, %v2030_v50  ;;  %v2105_v18 = vadd.f32 %v607_v56, %v2033_v51  ;;  %v2108_v59 = vadd.f32 %v608_v37, %v2036_v52  ;;  %v659_v26 = vld [vmem:[#allocation3 + $0x510] sm:$0xff]  ;;  %v660_v52 = vld [vmem:[#allocation3 + $0x518] sm:$0xff]  ;;  %v662_v33 = vld [vmem:[#allocation3 + $0x528] sm:$0xff] }
  0x68   : > { %v626_v13 = vmul.f32 %v1363_v31, %v619_v35  ;;  %v627_v14 = vmul.f32 %v1363_v31, %v620_v38  ;;  %v628_v44 = vmul.f32 %v1363_v31, %v621_v39  ;;  %v629_v15 = vmul.f32 %v1363_v31, %v622_v40  ;;  %v663_v39 = vld [vmem:[#allocation3 + $0x530] sm:$0xff]  ;;  %v664_v40 = vld [vmem:[#allocation3 + $0x538] sm:$0xff] }
  0x69   : > { %v2111_v22 = vadd.f32 %v624_v48, %v2039_v30  ;;  %v2114_v50 = vadd.f32 %v625_v54, %v2042_v55  ;;  %v645_v51 = vmul.f32 %v1364_v62, %v638_v43  ;;  %v646_v29 = vmul.f32 %v1364_v62, %v639_v60  ;;  %v661_v30 = vld [vmem:[#allocation3 + $0x520] sm:$0xff]  ;;  %v1365_v55 = vld [vmem:[#allocation2 + $0x1b] ss:$0 sm:$0xff] }
  0x6a   : > { %v2117_v24 = vadd.f32 %v626_v13, %v2045_v41  ;;  %v2120_v27 = vadd.f32 %v627_v14, %v2048_v57  ;;  %v2123_v35 = vadd.f32 %v628_v44, %v2051_v63  ;;  %v2126_v31 = vadd.f32 %v629_v15, %v2054_v0  ;;  %v680_v54 = vld [vmem:[#allocation3 + $0x540] sm:$0xff]  ;;  %v681_v0 = vld [vmem:[#allocation3 + $0x548] sm:$0xff]  ;;  %v683_v13 = vld [vmem:[#allocation3 + $0x558] sm:$0xff] }
  0x6b   : > { %v647_v34 = vmul.f32 %v1364_v62, %v640_v53  ;;  %v648_v56 = vmul.f32 %v1364_v62, %v641_v45  ;;  %v649_v37 = vmul.f32 %v1364_v62, %v642_v20  ;;  %v650_v38 = vmul.f32 %v1364_v62, %v643_v49  ;;  %v684_v20 = vld [vmem:[#allocation3 + $0x560] sm:$0xff]  ;;  %v685_v49 = vld [vmem:[#allocation3 + $0x568] sm:$0xff] }
  0x6c   : > { %v2129_v41 = vadd.f32 %v645_v51, %v2057_v61  ;;  %v2132_v57 = vadd.f32 %v646_v29, %v2060_v12  ;;  %v666_v63 = vmul.f32 %v1365_v55, %v659_v26  ;;  %v667_v48 = vmul.f32 %v1365_v55, %v660_v52  ;;  %v682_v61 = vld [vmem:[#allocation3 + $0x550] sm:$0xff]  ;;  %v1366_v12 = vld [vmem:[#allocation2 + $0x1c] ss:$0 sm:$0xff] }
  0x6d   : > { %v2135_v43 = vadd.f32 %v647_v34, %v2063_v21  ;;  %v2138_v60 = vadd.f32 %v648_v56, %v2066_v17  ;;  %v2141_v53 = vadd.f32 %v649_v37, %v2069_v28  ;;  %v2144_v62 = vadd.f32 %v650_v38, %v2072_v19  ;;  %v701_v29 = vld [vmem:[#allocation3 + $0x570] sm:$0xff]  ;;  %v702_v19 = vld [vmem:[#allocation3 + $0x578] sm:$0xff] }
  0x6e   : > { %v668_v14 = vmul.f32 %v1365_v55, %v661_v30  ;;  %v669_v44 = vmul.f32 %v1365_v55, %v662_v33  ;;  %v670_v15 = vmul.f32 %v1365_v55, %v663_v39  ;;  %v671_v45 = vmul.f32 %v1365_v55, %v664_v40  ;;  %v704_v55 = vld [vmem:[#allocation3 + $0x588] sm:$0xff]  ;;  %v705_v39 = vld [vmem:[#allocation3 + $0x590] sm:$0xff]  ;;  %v706_v40 = vld [vmem:[#allocation3 + $0x598] sm:$0xff] }
  0x6f   : > { %v2147_v21 = vadd.f32 %v666_v63, %v2075_v32  ;;  %v2150_v17 = vadd.f32 %v667_v48, %v2078_v23  ;;  %v687_v28 = vmul.f32 %v1366_v12, %v680_v54  ;;  %v688_v51 = vmul.f32 %v1366_v12, %v681_v0  ;;  %v703_v32 = vld [vmem:[#allocation3 + $0x580] sm:$0xff]  ;;  %v1367_v23 = vld [vmem:[#allocation2 + $0x1d] ss:$0 sm:$0xff] }
  0x70   : > { %v2153_v26 = vadd.f32 %v668_v14, %v2081_v47  ;;  %v2156_v52 = vadd.f32 %v669_v44, %v2084_v25  ;;  %v2159_v30 = vadd.f32 %v670_v15, %v2087_v58  ;;  %v2162_v33 = vadd.f32 %v671_v45, %v2090_v36  ;;  %v722_v48 = vld [vmem:[#allocation3 + $0x5a0] sm:$0xff]  ;;  %v723_v36 = vld [vmem:[#allocation3 + $0x5a8] sm:$0xff]  ;;  %v725_v45 = vld [vmem:[#allocation3 + $0x5b8] sm:$0xff] }
  0x71   : > { %v689_v34 = vmul.f32 %v1366_v12, %v682_v61  ;;  %v690_v56 = vmul.f32 %v1366_v12, %v683_v13  ;;  %v691_v37 = vmul.f32 %v1366_v12, %v684_v20  ;;  %v692_v38 = vmul.f32 %v1366_v12, %v685_v49  ;;  %v1368_v12 = vld [vmem:[#allocation2 + $0x1e] ss:$0 sm:$0xff]  ;;  %v726_v20 = vld [vmem:[#allocation3 + $0x5c0] sm:$0xff] }
  0x72   : > { %v2165_v47 = vadd.f32 %v687_v28, %v2093_v11  ;;  %v2168_v25 = vadd.f32 %v688_v51, %v2096_v42  ;;  %v708_v58 = vmul.f32 %v1367_v23, %v701_v29  ;;  %v709_v63 = vmul.f32 %v1367_v23, %v702_v19  ;;  %v724_v11 = vld [vmem:[#allocation3 + $0x5b0] sm:$0xff]  ;;  %v727_v49 = vld [vmem:[#allocation3 + $0x5c8] sm:$0xff] }
  0x73   : > { %v2171_v54 = vadd.f32 %v689_v34, %v2099_v16  ;;  %v2174_v0 = vadd.f32 %v690_v56, %v2102_v46  ;;  %v2177_v61 = vadd.f32 %v691_v37, %v2105_v18  ;;  %v2180_v13 = vadd.f32 %v692_v38, %v2108_v59  ;;  %v743_v51 = vld [vmem:[#allocation3 + $0x5d0] sm:$0xff]  ;;  %v744_v59 = vld [vmem:[#allocation3 + $0x5d8] sm:$0xff]  ;;  %v746_v38 = vld [vmem:[#allocation3 + $0x5e8] sm:$0xff] }
  0x74   : > { %v710_v42 = vmul.f32 %v1367_v23, %v703_v32  ;;  %v711_v14 = vmul.f32 %v1367_v23, %v704_v55  ;;  %v712_v44 = vmul.f32 %v1367_v23, %v705_v39  ;;  %v713_v15 = vmul.f32 %v1367_v23, %v706_v40  ;;  %v1369_v23 = vld [vmem:[#allocation2 + $0x1f] ss:$0 sm:$0xff]  ;;  %v747_v39 = vld [vmem:[#allocation3 + $0x5f0] sm:$0xff]  ;;  %v748_v40 = vld [vmem:[#allocation3 + $0x5f8] sm:$0xff] }
  0x75   : > { %v2183_v16 = vadd.f32 %v708_v58, %v2111_v22  ;;  %v2186_v46 = vadd.f32 %v709_v63, %v2114_v50  ;;  %v729_v18 = vmul.f32 %v1368_v12, %v722_v48  ;;  %v730_v28 = vmul.f32 %v1368_v12, %v723_v36  ;;  %v745_v22 = vld [vmem:[#allocation3 + $0x5e0] sm:$0xff] }
  0x76   : > { %v2189_v29 = vadd.f32 %v710_v42, %v2117_v24  ;;  %v2192_v19 = vadd.f32 %v711_v14, %v2120_v27  ;;  %v2195_v32 = vadd.f32 %v712_v44, %v2123_v35  ;;  %v2198_v55 = vadd.f32 %v713_v15, %v2126_v31  ;;  %v764_v63 = vld [vmem:[#allocation3 + $0x600] sm:$0xff]  ;;  %v765_v31 = vld [vmem:[#allocation3 + $0x608] sm:$0xff]  ;;  %v1370_v42 = vld [vmem:[#allocation2 + $0x20] ss:$0 sm:$0xff] }
  0x77   : > { %v731_v50 = vmul.f32 %v1368_v12, %v724_v11  ;;  %v732_v34 = vmul.f32 %v1368_v12, %v725_v45  ;;  %v733_v56 = vmul.f32 %v1368_v12, %v726_v20  ;;  %v734_v37 = vmul.f32 %v1368_v12, %v727_v49  ;;  %v767_v45 = vld [vmem:[#allocation3 + $0x618] sm:$0xff]  ;;  %v768_v20 = vld [vmem:[#allocation3 + $0x620] sm:$0xff]  ;;  %v769_v49 = vld [vmem:[#allocation3 + $0x628] sm:$0xff] }
  0x78   : > { %v2201_v24 = vadd.f32 %v729_v18, %v2129_v41  ;;  %v2204_v27 = vadd.f32 %v730_v28, %v2132_v57  ;;  %v750_v35 = vmul.f32 %v1369_v23, %v743_v51  ;;  %v751_v58 = vmul.f32 %v1369_v23, %v744_v59  ;;  %v766_v41 = vld [vmem:[#allocation3 + $0x610] sm:$0xff] }
  0x79   : > { %v2207_v48 = vadd.f32 %v731_v50, %v2135_v43  ;;  %v2210_v36 = vadd.f32 %v732_v34, %v2138_v60  ;;  %v2213_v11 = vadd.f32 %v733_v56, %v2141_v53  ;;  %v2216_v12 = vadd.f32 %v734_v37, %v2144_v62  ;;  %v785_v28 = vld [vmem:[#allocation3 + $0x630] sm:$0xff]  ;;  %v786_v62 = vld [vmem:[#allocation3 + $0x638] sm:$0xff] }
  0x7a   : > { %v752_v57 = vmul.f32 %v1369_v23, %v745_v22  ;;  %v753_v14 = vmul.f32 %v1369_v23, %v746_v38  ;;  %v754_v44 = vmul.f32 %v1369_v23, %v747_v39  ;;  %v755_v15 = vmul.f32 %v1369_v23, %v748_v40  ;;  %v1371_v50 = vld [vmem:[#allocation2 + $0x21] ss:$0 sm:$0xff]  ;;  %v788_v38 = vld [vmem:[#allocation3 + $0x648] sm:$0xff]  ;;  %v790_v40 = vld [vmem:[#allocation3 + $0x658] sm:$0xff] }
  0x7b   : > { %v2219_v43 = vadd.f32 %v750_v35, %v2147_v21  ;;  %v2222_v60 = vadd.f32 %v751_v58, %v2150_v17  ;;  %v771_v53 = vmul.f32 %v1370_v42, %v764_v63  ;;  %v772_v18 = vmul.f32 %v1370_v42, %v765_v31  ;;  %v787_v21 = vld [vmem:[#allocation3 + $0x640] sm:$0xff]  ;;  %v789_v39 = vld [vmem:[#allocation3 + $0x650] sm:$0xff] }
  0x7c   : > { %v2225_v51 = vadd.f32 %v752_v57, %v2153_v26  ;;  %v2228_v59 = vadd.f32 %v753_v14, %v2156_v52  ;;  %v2231_v22 = vadd.f32 %v754_v44, %v2159_v30  ;;  %v2234_v23 = vadd.f32 %v755_v15, %v2162_v33  ;;  %v806_v58 = vld [vmem:[#allocation3 + $0x660] sm:$0xff]  ;;  %v807_v33 = vld [vmem:[#allocation3 + $0x668] sm:$0xff]  ;;  %v1372_v57 = vld [vmem:[#allocation2 + $0x22] ss:$0 sm:$0xff] }
  0x7d   : > { %v773_v17 = vmul.f32 %v1370_v42, %v766_v41  ;;  %v774_v34 = vmul.f32 %v1370_v42, %v767_v45  ;;  %v775_v56 = vmul.f32 %v1370_v42, %v768_v20  ;;  %v776_v37 = vmul.f32 %v1370_v42, %v769_v49  ;;  %v809_v45 = vld [vmem:[#allocation3 + $0x678] sm:$0xff]  ;;  %v810_v20 = vld [vmem:[#allocation3 + $0x680] sm:$0xff]  ;;  %v811_v49 = vld [vmem:[#allocation3 + $0x688] sm:$0xff] }
  0x7e   : > { %v2237_v26 = vadd.f32 %v771_v53, %v2165_v47  ;;  %v2240_v52 = vadd.f32 %v772_v18, %v2168_v25  ;;  %v792_v30 = vmul.f32 %v1371_v50, %v785_v28  ;;  %v793_v35 = vmul.f32 %v1371_v50, %v786_v62  ;;  %v808_v47 = vld [vmem:[#allocation3 + $0x670] sm:$0xff] }
  0x7f   : > { %v2243_v63 = vadd.f32 %v773_v17, %v2171_v54  ;;  %v2246_v31 = vadd.f32 %v774_v34, %v2174_v0  ;;  %v2249_v41 = vadd.f32 %v775_v56, %v2177_v61  ;;  %v2252_v42 = vadd.f32 %v776_v37, %v2180_v13  ;;  %v827_v18 = vld [vmem:[#allocation3 + $0x690] sm:$0xff]  ;;  %v828_v13 = vld [vmem:[#allocation3 + $0x698] sm:$0xff]  ;;  %v830_v17 = vld [vmem:[#allocation3 + $0x6a8] sm:$0xff] }
  0x80   : > { %v794_v25 = vmul.f32 %v1371_v50, %v787_v21  ;;  %v795_v14 = vmul.f32 %v1371_v50, %v788_v38  ;;  %v796_v44 = vmul.f32 %v1371_v50, %v789_v39  ;;  %v797_v15 = vmul.f32 %v1371_v50, %v790_v40  ;;  %v831_v39 = vld [vmem:[#allocation3 + $0x6b0] sm:$0xff]  ;;  %v832_v40 = vld [vmem:[#allocation3 + $0x6b8] sm:$0xff] }
  0x81   : > { %v2255_v54 = vadd.f32 %v792_v30, %v2183_v16  ;;  %v2258_v0 = vadd.f32 %v793_v35, %v2186_v46  ;;  %v813_v61 = vmul.f32 %v1372_v57, %v806_v58  ;;  %v814_v53 = vmul.f32 %v1372_v57, %v807_v33  ;;  %v829_v16 = vld [vmem:[#allocation3 + $0x6a0] sm:$0xff]  ;;  %v1373_v46 = vld [vmem:[#allocation2 + $0x23] ss:$0 sm:$0xff] }
  0x82   : > { %v2261_v28 = vadd.f32 %v794_v25, %v2189_v29  ;;  %v2264_v62 = vadd.f32 %v795_v14, %v2192_v19  ;;  %v2267_v21 = vadd.f32 %v796_v44, %v2195_v32  ;;  %v2270_v50 = vadd.f32 %v797_v15, %v2198_v55  ;;  %v848_v35 = vld [vmem:[#allocation3 + $0x6c0] sm:$0xff]  ;;  %v849_v55 = vld [vmem:[#allocation3 + $0x6c8] sm:$0xff]  ;;  %v851_v25 = vld [vmem:[#allocation3 + $0x6d8] sm:$0xff] }
  0x83   : > { %v815_v34 = vmul.f32 %v1372_v57, %v808_v47  ;;  %v816_v56 = vmul.f32 %v1372_v57, %v809_v45  ;;  %v817_v37 = vmul.f32 %v1372_v57, %v810_v20  ;;  %v818_v38 = vmul.f32 %v1372_v57, %v811_v49  ;;  %v852_v20 = vld [vmem:[#allocation3 + $0x6e0] sm:$0xff]  ;;  %v853_v49 = vld [vmem:[#allocation3 + $0x6e8] sm:$0xff] }
  0x84   : > { %v2273_v29 = vadd.f32 %v813_v61, %v2201_v24  ;;  %v2276_v19 = vadd.f32 %v814_v53, %v2204_v27  ;;  %v834_v32 = vmul.f32 %v1373_v46, %v827_v18  ;;  %v835_v30 = vmul.f32 %v1373_v46, %v828_v13  ;;  %v850_v24 = vld [vmem:[#allocation3 + $0x6d0] sm:$0xff] }
  0x85   : > { %v2279_v58 = vadd.f32 %v815_v34, %v2207_v48  ;;  %v2282_v33 = vadd.f32 %v816_v56, %v2210_v36  ;;  %v2285_v47 = vadd.f32 %v817_v37, %v2213_v11  ;;  %v2288_v57 = vadd.f32 %v818_v38, %v2216_v12  ;;  %v1374_v27 = vld [vmem:[#allocation2 + $0x24] ss:$0 sm:$0xff]  ;;  %v870_v12 = vld [vmem:[#allocation3 + $0x6f8] sm:$0xff] }
  0x86   : > { %v836_v14 = vmul.f32 %v1373_v46, %v829_v16  ;;  %v837_v44 = vmul.f32 %v1373_v46, %v830_v17  ;;  %v838_v15 = vmul.f32 %v1373_v46, %v831_v39  ;;  %v839_v45 = vmul.f32 %v1373_v46, %v832_v40  ;;  %v869_v53 = vld [vmem:[#allocation3 + $0x6f0] sm:$0xff]  ;;  %v872_v46 = vld [vmem:[#allocation3 + $0x708] sm:$0xff]  ;;  %v874_v40 = vld [vmem:[#allocation3 + $0x718] sm:$0xff] }
  0x87   : > { %v2291_v48 = vadd.f32 %v834_v32, %v2219_v43  ;;  %v2294_v36 = vadd.f32 %v835_v30, %v2222_v60  ;;  %v855_v11 = vmul.f32 %v1374_v27, %v848_v35  ;;  %v856_v61 = vmul.f32 %v1374_v27, %v849_v55  ;;  %v871_v43 = vld [vmem:[#allocation3 + $0x700] sm:$0xff]  ;;  %v1375_v60 = vld [vmem:[#allocation2 + $0x25] ss:$0 sm:$0xff] }
  0x88   : > { %v2297_v18 = vadd.f32 %v836_v14, %v2225_v51  ;;  %v2300_v13 = vadd.f32 %v837_v44, %v2228_v59  ;;  %v2303_v16 = vadd.f32 %v838_v15, %v2231_v22  ;;  %v2306_v17 = vadd.f32 %v839_v45, %v2234_v23  ;;  %v873_v39 = vld [vmem:[#allocation3 + $0x710] sm:$0xff]  ;;  %v890_v30 = vld [vmem:[#allocation3 + $0x720] sm:$0xff]  ;;  %v891_v23 = vld [vmem:[#allocation3 + $0x728] sm:$0xff] }
  0x89   : > { %v857_v34 = vmul.f32 %v1374_v27, %v850_v24  ;;  %v858_v56 = vmul.f32 %v1374_v27, %v851_v25  ;;  %v859_v37 = vmul.f32 %v1374_v27, %v852_v20  ;;  %v860_v38 = vmul.f32 %v1374_v27, %v853_v49  ;;  %v1376_v27 = vld [vmem:[#allocation2 + $0x26] ss:$0 sm:$0xff]  ;;  %v893_v45 = vld [vmem:[#allocation3 + $0x738] sm:$0xff]  ;;  %v894_v20 = vld [vmem:[#allocation3 + $0x740] sm:$0xff] }
  0x8a   : > { %v2309_v51 = vadd.f32 %v855_v11, %v2237_v26  ;;  %v2312_v59 = vadd.f32 %v856_v61, %v2240_v52  ;;  %v876_v22 = vmul.f32 %v1375_v60, %v869_v53  ;;  %v877_v32 = vmul.f32 %v1375_v60, %v870_v12  ;;  %v892_v26 = vld [vmem:[#allocation3 + $0x730] sm:$0xff]  ;;  %v895_v49 = vld [vmem:[#allocation3 + $0x748] sm:$0xff] }
  0x8b   : > { %v2315_v35 = vadd.f32 %v857_v34, %v2243_v63  ;;  %v2318_v55 = vadd.f32 %v858_v56, %v2246_v31  ;;  %v2321_v24 = vadd.f32 %v859_v37, %v2249_v41  ;;  %v2324_v25 = vadd.f32 %v860_v38, %v2252_v42  ;;  %v911_v61 = vld [vmem:[#allocation3 + $0x750] sm:$0xff]  ;;  %v912_v42 = vld [vmem:[#allocation3 + $0x758] sm:$0xff]  ;;  %v914_v38 = vld [vmem:[#allocation3 + $0x768] sm:$0xff] }
  0x8c   : > { %v878_v52 = vmul.f32 %v1375_v60, %v871_v43  ;;  %v879_v14 = vmul.f32 %v1375_v60, %v872_v46  ;;  %v880_v44 = vmul.f32 %v1375_v60, %v873_v39  ;;  %v881_v15 = vmul.f32 %v1375_v60, %v874_v40  ;;  %v1377_v60 = vld [vmem:[#allocation2 + $0x27] ss:$0 sm:$0xff]  ;;  %v916_v40 = vld [vmem:[#allocation3 + $0x778] sm:$0xff] }
  0x8d   : > { %v2327_v63 = vadd.f32 %v876_v22, %v2255_v54  ;;  %v2330_v31 = vadd.f32 %v877_v32, %v2258_v0  ;;  %v897_v41 = vmul.f32 %v1376_v27, %v890_v30  ;;  %v898_v11 = vmul.f32 %v1376_v27, %v891_v23  ;;  %v913_v54 = vld [vmem:[#allocation3 + $0x760] sm:$0xff]  ;;  %v915_v39 = vld [vmem:[#allocation3 + $0x770] sm:$0xff] }
  0x8e   : > { %v2333_v53 = vadd.f32 %v878_v52, %v2261_v28  ;;  %v2336_v12 = vadd.f32 %v879_v14, %v2264_v62  ;;  %v2339_v43 = vadd.f32 %v880_v44, %v2267_v21  ;;  %v2342_v46 = vadd.f32 %v881_v15, %v2270_v50  ;;  %v932_v32 = vld [vmem:[#allocation3 + $0x780] sm:$0xff]  ;;  %v933_v50 = vld [vmem:[#allocation3 + $0x788] sm:$0xff]  ;;  %v1378_v52 = vld [vmem:[#allocation2 + $0x28] ss:$0 sm:$0xff] }
  0x8f   : > { %v899_v0 = vmul.f32 %v1376_v27, %v892_v26  ;;  %v900_v34 = vmul.f32 %v1376_v27, %v893_v45  ;;  %v901_v56 = vmul.f32 %v1376_v27, %v894_v20  ;;  %v902_v37 = vmul.f32 %v1376_v27, %v895_v49  ;;  %v935_v45 = vld [vmem:[#allocation3 + $0x798] sm:$0xff]  ;;  %v936_v20 = vld [vmem:[#allocation3 + $0x7a0] sm:$0xff]  ;;  %v937_v49 = vld [vmem:[#allocation3 + $0x7a8] sm:$0xff] }
  0x90   : > { %v2345_v28 = vadd.f32 %v897_v41, %v2273_v29  ;;  %v2348_v62 = vadd.f32 %v898_v11, %v2276_v19  ;;  %v918_v21 = vmul.f32 %v1377_v60, %v911_v61  ;;  %v919_v22 = vmul.f32 %v1377_v60, %v912_v42  ;;  %v934_v29 = vld [vmem:[#allocation3 + $0x790] sm:$0xff] }
  0x91   : > { %v2351_v30 = vadd.f32 %v899_v0, %v2279_v58  ;;  %v2354_v23 = vadd.f32 %v900_v34, %v2282_v33  ;;  %v2357_v26 = vadd.f32 %v901_v56, %v2285_v47  ;;  %v2360_v27 = vadd.f32 %v902_v37, %v2288_v57  ;;  %v953_v11 = vld [vmem:[#allocation3 + $0x7b0] sm:$0xff]  ;;  %v954_v57 = vld [vmem:[#allocation3 + $0x7b8] sm:$0xff] }
  0x92   : > { %v920_v19 = vmul.f32 %v1377_v60, %v913_v54  ;;  %v921_v14 = vmul.f32 %v1377_v60, %v914_v38  ;;  %v922_v44 = vmul.f32 %v1377_v60, %v915_v39  ;;  %v923_v15 = vmul.f32 %v1377_v60, %v916_v40  ;;  %v1379_v0 = vld [vmem:[#allocation2 + $0x29] ss:$0 sm:$0xff]  ;;  %v956_v38 = vld [vmem:[#allocation3 + $0x7c8] sm:$0xff]  ;;  %v957_v39 = vld [vmem:[#allocation3 + $0x7d0] sm:$0xff] }
  0x93   : > { %v2363_v58 = vadd.f32 %v918_v21, %v2291_v48  ;;  %v2366_v33 = vadd.f32 %v919_v22, %v2294_v36  ;;  %v939_v47 = vmul.f32 %v1378_v52, %v932_v32  ;;  %v940_v41 = vmul.f32 %v1378_v52, %v933_v50  ;;  %v955_v48 = vld [vmem:[#allocation3 + $0x7c0] sm:$0xff]  ;;  %v958_v40 = vld [vmem:[#allocation3 + $0x7d8] sm:$0xff] }
  0x94   : > { %v2369_v61 = vadd.f32 %v920_v19, %v2297_v18  ;;  %v2372_v42 = vadd.f32 %v921_v14, %v2300_v13  ;;  %v2375_v54 = vadd.f32 %v922_v44, %v2303_v16  ;;  %v2378_v60 = vadd.f32 %v923_v15, %v2306_v17  ;;  %v974_v22 = vld [vmem:[#allocation3 + $0x7e0] sm:$0xff]  ;;  %v975_v17 = vld [vmem:[#allocation3 + $0x7e8] sm:$0xff]  ;;  %v1380_v19 = vld [vmem:[#allocation2 + $0x2a] ss:$0 sm:$0xff] }
  0x95   : > { %v941_v36 = vmul.f32 %v1378_v52, %v934_v29  ;;  %v942_v34 = vmul.f32 %v1378_v52, %v935_v45  ;;  %v943_v56 = vmul.f32 %v1378_v52, %v936_v20  ;;  %v944_v37 = vmul.f32 %v1378_v52, %v937_v49  ;;  %v977_v45 = vld [vmem:[#allocation3 + $0x7f8] sm:$0xff]  ;;  %v978_v20 = vld [vmem:[#allocation3 + $0x800] sm:$0xff]  ;;  %v979_v49 = vld [vmem:[#allocation3 + $0x808] sm:$0xff] }
  0x96   : > { %v2381_v18 = vadd.f32 %v939_v47, %v2309_v51  ;;  %v2384_v13 = vadd.f32 %v940_v41, %v2312_v59  ;;  %v960_v16 = vmul.f32 %v1379_v0, %v953_v11  ;;  %v961_v21 = vmul.f32 %v1379_v0, %v954_v57  ;;  %v976_v51 = vld [vmem:[#allocation3 + $0x7f0] sm:$0xff] }
  0x97   : > { %v2387_v32 = vadd.f32 %v941_v36, %v2315_v35  ;;  %v2390_v50 = vadd.f32 %v942_v34, %v2318_v55  ;;  %v2393_v29 = vadd.f32 %v943_v56, %v2321_v24  ;;  %v2396_v52 = vadd.f32 %v944_v37, %v2324_v25  ;;  %v995_v41 = vld [vmem:[#allocation3 + $0x810] sm:$0xff]  ;;  %v996_v25 = vld [vmem:[#allocation3 + $0x818] sm:$0xff] }
  0x98   : > { %v962_v59 = vmul.f32 %v1379_v0, %v955_v48  ;;  %v963_v14 = vmul.f32 %v1379_v0, %v956_v38  ;;  %v964_v44 = vmul.f32 %v1379_v0, %v957_v39  ;;  %v965_v15 = vmul.f32 %v1379_v0, %v958_v40  ;;  %v1381_v36 = vld [vmem:[#allocation2 + $0x2b] ss:$0 sm:$0xff]  ;;  %v998_v38 = vld [vmem:[#allocation3 + $0x828] sm:$0xff]  ;;  %v999_v39 = vld [vmem:[#allocation3 + $0x830] sm:$0xff] }
  0x99   : > { %v2399_v35 = vadd.f32 %v960_v16, %v2327_v63  ;;  %v2402_v55 = vadd.f32 %v961_v21, %v2330_v31  ;;  %v981_v24 = vmul.f32 %v1380_v19, %v974_v22  ;;  %v982_v47 = vmul.f32 %v1380_v19, %v975_v17  ;;  %v997_v63 = vld [vmem:[#allocation3 + $0x820] sm:$0xff]  ;;  %v1000_v40 = vld [vmem:[#allocation3 + $0x838] sm:$0xff] }
  0x9a   : > { %v2405_v11 = vadd.f32 %v962_v59, %v2333_v53  ;;  %v2408_v57 = vadd.f32 %v963_v14, %v2336_v12  ;;  %v2411_v48 = vadd.f32 %v964_v44, %v2339_v43  ;;  %v2414_v0 = vadd.f32 %v965_v15, %v2342_v46  ;;  %v1016_v21 = vld [vmem:[#allocation3 + $0x840] sm:$0xff]  ;;  %v1017_v46 = vld [vmem:[#allocation3 + $0x848] sm:$0xff]  ;;  %v1382_v59 = vld [vmem:[#allocation2 + $0x2c] ss:$0 sm:$0xff] }
  0x9b   : > { %v983_v31 = vmul.f32 %v1380_v19, %v976_v51  ;;  %v984_v34 = vmul.f32 %v1380_v19, %v977_v45  ;;  %v985_v56 = vmul.f32 %v1380_v19, %v978_v20  ;;  %v986_v37 = vmul.f32 %v1380_v19, %v979_v49  ;;  %v1019_v45 = vld [vmem:[#allocation3 + $0x858] sm:$0xff]  ;;  %v1020_v20 = vld [vmem:[#allocation3 + $0x860] sm:$0xff]  ;;  %v1021_v49 = vld [vmem:[#allocation3 + $0x868] sm:$0xff] }
  0x9c   : > { %v2417_v53 = vadd.f32 %v981_v24, %v2345_v28  ;;  %v2420_v12 = vadd.f32 %v982_v47, %v2348_v62  ;;  %v1002_v43 = vmul.f32 %v1381_v36, %v995_v41  ;;  %v1003_v16 = vmul.f32 %v1381_v36, %v996_v25  ;;  %v1018_v28 = vld [vmem:[#allocation3 + $0x850] sm:$0xff] }
  0x9d   : > { %v2423_v22 = vadd.f32 %v983_v31, %v2351_v30  ;;  %v2426_v17 = vadd.f32 %v984_v34, %v2354_v23  ;;  %v2429_v51 = vadd.f32 %v985_v56, %v2357_v26  ;;  %v2432_v19 = vadd.f32 %v986_v37, %v2360_v27  ;;  %v1037_v47 = vld [vmem:[#allocation3 + $0x870] sm:$0xff]  ;;  %v1038_v27 = vld [vmem:[#allocation3 + $0x878] sm:$0xff] }
  0x9e   : > { %v1004_v62 = vmul.f32 %v1381_v36, %v997_v63  ;;  %v1005_v14 = vmul.f32 %v1381_v36, %v998_v38  ;;  %v1006_v44 = vmul.f32 %v1381_v36, %v999_v39  ;;  %v1007_v15 = vmul.f32 %v1381_v36, %v1000_v40  ;;  %v1383_v31 = vld [vmem:[#allocation2 + $0x2d] ss:$0 sm:$0xff]  ;;  %v1040_v38 = vld [vmem:[#allocation3 + $0x888] sm:$0xff]  ;;  %v1041_v39 = vld [vmem:[#allocation3 + $0x890] sm:$0xff] }
  0x9f   : > { %v2435_v30 = vadd.f32 %v1002_v43, %v2363_v58  ;;  %v2438_v23 = vadd.f32 %v1003_v16, %v2366_v33  ;;  %v1023_v26 = vmul.f32 %v1382_v59, %v1016_v21  ;;  %v1024_v24 = vmul.f32 %v1382_v59, %v1017_v46  ;;  %v1039_v58 = vld [vmem:[#allocation3 + $0x880] sm:$0xff]  ;;  %v1042_v40 = vld [vmem:[#allocation3 + $0x898] sm:$0xff]  ;;  %v1059_v21 = vld [vmem:[#allocation3 + $0x8a8] sm:$0xff] }
  0xa0   : > { %v2441_v41 = vadd.f32 %v1004_v62, %v2369_v61  ;;  %v2444_v25 = vadd.f32 %v1005_v14, %v2372_v42  ;;  %v2447_v63 = vadd.f32 %v1006_v44, %v2375_v54  ;;  %v2450_v36 = vadd.f32 %v1007_v15, %v2378_v60  ;;  %v1058_v54 = vld [vmem:[#allocation3 + $0x8a0] sm:$0xff]  ;;  %v1384_v14 = vld [vmem:[#allocation2 + $0x2e] ss:$0 sm:$0xff] }
  0xa1   : > { %v1025_v33 = vmul.f32 %v1382_v59, %v1018_v28  ;;  %v1026_v34 = vmul.f32 %v1382_v59, %v1019_v45  ;;  %v1027_v56 = vmul.f32 %v1382_v59, %v1020_v20  ;;  %v1028_v37 = vmul.f32 %v1382_v59, %v1021_v49  ;;  %v1060_v59 = vld [vmem:[#allocation3 + $0x8b0] sm:$0xff]  ;;  %v1061_v20 = vld [vmem:[#allocation3 + $0x8b8] sm:$0xff]  ;;  %v1063_v49 = vld [vmem:[#allocation3 + $0x8c8] sm:$0xff] }
  0xa2   : > { %v1029_v61 = vadd.f32 %v1023_v26, %v2381_v18  ;;  %v1030_v42 = vadd.f32 %v1024_v24, %v2384_v13  ;;  %v1044_v43 = vmul.f32 %v1383_v31, %v1037_v47  ;;  %v1045_v16 = vmul.f32 %v1383_v31, %v1038_v27  ;;  %v1062_v13 = vld [vmem:[#allocation3 + $0x8c0] sm:$0xff]  ;;  %v1080_v27 = vld [vmem:[#allocation3 + $0x8d8] sm:$0xff] }
  0xa3   : > { %v1031_v60 = vadd.f32 %v1025_v33, %v2387_v32  ;;  %v1032_v46 = vadd.f32 %v1026_v34, %v2390_v50  ;;  %v1033_v28 = vadd.f32 %v1027_v56, %v2393_v29  ;;  %v1034_v62 = vadd.f32 %v1028_v37, %v2396_v52  ;;  %v1079_v50 = vld [vmem:[#allocation3 + $0x8d0] sm:$0xff]  ;;  %v1385_v34 = vld [vmem:[#allocation2 + $0x2f] ss:$0 sm:$0xff] }
  0xa4   : > { %v1046_v44 = vmul.f32 %v1383_v31, %v1039_v58  ;;  %v1047_v15 = vmul.f32 %v1383_v31, %v1040_v38  ;;  %v1048_v45 = vmul.f32 %v1383_v31, %v1041_v39  ;;  %v1049_v18 = vmul.f32 %v1383_v31, %v1042_v40  ;;  %v1081_v31 = vld [vmem:[#allocation3 + $0x8e0] sm:$0xff]  ;;  %v1082_v39 = vld [vmem:[#allocation3 + $0x8e8] sm:$0xff]  ;;  %v1084_v40 = vld [vmem:[#allocation3 + $0x8f8] sm:$0xff] }
  0xa5   : > { %v1050_v26 = vadd.f32 %v1044_v43, %v2399_v35  ;;  %v1051_v24 = vadd.f32 %v1045_v16, %v2402_v55  ;;  %v1065_v32 = vmul.f32 %v1384_v14, %v1058_v54  ;;  %v1066_v47 = vmul.f32 %v1384_v14, %v1059_v21  ;;  %v1083_v55 = vld [vmem:[#allocation3 + $0x8f0] sm:$0xff] }
  0xa6   : > { %v1052_v29 = vadd.f32 %v1046_v44, %v2405_v11  ;;  %v1053_v52 = vadd.f32 %v1047_v15, %v2408_v57  ;;  %v1054_v58 = vadd.f32 %v1048_v45, %v2411_v48  ;;  %v1055_v33 = vadd.f32 %v1049_v18, %v2414_v0 }
  0xa7   : > { %v1067_v56 = vmul.f32 %v1384_v14, %v1060_v59  ;;  %v1068_v37 = vmul.f32 %v1384_v14, %v1061_v20  ;;  %v1069_v38 = vmul.f32 %v1384_v14, %v1062_v13  ;;  %v1070_v35 = vmul.f32 %v1384_v14, %v1063_v49 }
  0xa8   : > { %v1071_v43 = vadd.f32 %v1065_v32, %v2417_v53  ;;  %v1072_v16 = vadd.f32 %v1066_v47, %v2420_v12  ;;  %v1086_v11 = vmul.f32 %v1385_v34, %v1079_v50  ;;  %v1087_v54 = vmul.f32 %v1385_v34, %v1080_v27 }
  0xa9   : > { %v1073_v57 = vadd.f32 %v1067_v56, %v2423_v22  ;;  %v1074_v48 = vadd.f32 %v1068_v37, %v2426_v17  ;;  %v1075_v0 = vadd.f32 %v1069_v38, %v2429_v51  ;;  %v1076_v21 = vadd.f32 %v1070_v35, %v2432_v19 }
  0xaa   : > { %v1088_v59 = vmul.f32 %v1385_v34, %v1081_v31  ;;  %v1089_v44 = vmul.f32 %v1385_v34, %v1082_v39  ;;  %v1090_v14 = vmul.f32 %v1385_v34, %v1083_v55  ;;  %v1091_v15 = vmul.f32 %v1385_v34, %v1084_v40  ;;  %v1144_v40 = vld [vmem:[#allocation8] sm:$0xff] }
  0xab   : > { %v1092_v45 = vadd.f32 %v1086_v11, %v2435_v30  ;;  %v1093_v53 = vadd.f32 %v1087_v54, %v2438_v23  ;;  %v1098_v18 = vadd.f32 %v1050_v26, %v1029_v61  ;;  %v1099_v12 = vadd.f32 %v1051_v24, %v1030_v42  ;;  %v1147_v11 = vld [vmem:[#allocation8 + $0x18] sm:$0xff] }
  0xac   : > { %v1094_v20 = vadd.f32 %v1088_v59, %v2441_v41  ;;  %v1095_v22 = vadd.f32 %v1089_v44, %v2444_v25  ;;  %v1096_v17 = vadd.f32 %v1090_v14, %v2447_v63  ;;  %v1097_v51 = vadd.f32 %v1091_v15, %v2450_v36  ;;  %v1150_v59 = vld [vmem:[#allocation9 + $0x10] sm:$0xff]  ;;  %v1151_v44 = vld [vmem:[#allocation9 + $0x18] sm:$0xff] }
  0xad   : > { %v1100_v13 = vadd.f32 %v1052_v29, %v1031_v60  ;;  %v1101_v19 = vadd.f32 %v1053_v52, %v1032_v46  ;;  %v1102_v49 = vadd.f32 %v1054_v58, %v1033_v28  ;;  %v1103_v32 = vadd.f32 %v1055_v33, %v1034_v62 }
  0xae   : > { %v1104_v47 = vadd.f32 %v1098_v18, %v1071_v43  ;;  %v1105_v50 = vadd.f32 %v1099_v12, %v1072_v16  ;;  %v1118_v30 = vmul.f32 -0.6, %v1596_v10  ;;  %v1119_v23 = vmul.f32 -0.6, %v1592_v9  ;;  %v1145_v16 = vld [vmem:[#allocation8 + $0x8] sm:$0xff] }
  0xaf   : > { %v1106_v61 = vadd.f32 %v1100_v13, %v1073_v57  ;;  %v1107_v42 = vadd.f32 %v1101_v19, %v1074_v48  ;;  %v1108_v26 = vadd.f32 %v1102_v49, %v1075_v0  ;;  %v1109_v41 = vadd.f32 %v1103_v32, %v1076_v21  ;;  %v1148_v0 = vld [vmem:[#allocation9] sm:$0xff]  ;;  %v1149_v21 = vld [vmem:[#allocation9 + $0x8] sm:$0xff] }
  0xb0   : > { %v1110_v24 = vadd.f32 %v1104_v47, %v1092_v45  ;;  %v1111_v25 = vadd.f32 %v1105_v50, %v1093_v53  ;;  %v1128_v63 = vmul.f32 -0.6, %v1588_v8  ;;  %v1129_v36 = vmul.f32 -0.6, %v1584_v7 }
  0xb1   : > { %v1112_v60 = vadd.f32 %v1106_v61, %v1094_v20  ;;  %v1113_v46 = vadd.f32 %v1107_v42, %v1095_v22  ;;  %v1114_v28 = vadd.f32 %v1108_v26, %v1096_v17  ;;  %v1115_v62 = vadd.f32 %v1109_v41, %v1097_v51 }
  0xb2   : > { %v1116_v27 = vmul.f32 1.6, %v1110_v24  ;;  %v1117_v29 = vmul.f32 1.6, %v1111_v25  ;;  %v1130_v10 = vmul.f32 -0.6, %v1580_v6 }
  0xb3   : > { %v1124_v52 = vmul.f32 1.6, %v1112_v60  ;;  %v1125_v9 = vmul.f32 1.6, %v1113_v46  ;;  %v1126_v58 = vmul.f32 1.6, %v1114_v28 }
  0xb4   : > { %v2481_v33 = vadd.f32 %v1118_v30, %v1116_v27   ;;  %v2483_v31 = vadd.f32 %v1119_v23, %v1117_v29   ;;  %v1127_v34 = vmul.f32 1.6, %v1115_v62  ;;  %v1131_v8 = vmul.f32 -0.6, %v1576_v5  ;;  %v1146_v5 = vld [vmem:[#allocation8 + $0x10] sm:$0xff] }
  0xb5   : > { %v1132_v56 = vadd.f32 %v1128_v63, %v1124_v52  ;;  %v1133_v7 = vadd.f32 %v1129_v36, %v1125_v9  ;;  %v1134_v37 = vadd.f32 %v1130_v10, %v1126_v58  ;;  %v1136_v38 = vmul.f32 10.0, %v1572_v4 }
  0xb6   : > { %1122 = vst [vmem:[#allocation2] sm:$0xff] %v2481_v33  ;;  %v1135_v35 = vadd.f32 %v1131_v8, %v1127_v34  ;;  %v1137_v6 = vmul.f32 10.0, %v1568_v3  ;;  %v1138_v39 = vmul.f32 10.0, %v1564_v2  ;;  %v1139_v55 = vmul.f32 10.0, %v1560_v1 }
  0xb7   : > { %1123 = vst [vmem:[#allocation2 + $0x8] sm:$0xff] %v2483_v31  ;;  %v1140_v43 = vadd.f32 %v1136_v38, %v1132_v56  ;;  %v2535_v9 = vmov %v2483_v31  ;;  %v2536_v10 = vmov %v2481_v33 }
  0xb8   : > { %v1141_v54 = vadd.f32 %v1137_v6, %v1133_v7  ;;  %v1142_v57 = vadd.f32 %v1138_v39, %v1134_v37  ;;  %v1143_v48 = vadd.f32 %v1139_v55, %v1135_v35  ;;  %1184 = vst [vmem:[#allocation11] sm:$0xff] (%p89_p0), %v2481_v33 }
  0xb9   : > { %v1152_v14 = vmax.f32 %v1144_v40, %v1140_v43  ;;  %1185 = vst [vmem:[#allocation11 + $0x8] sm:$0xff] (%p89_p0), %v2483_v31 }
  0xba   : > { %v1153_v15 = vmax.f32 %v1145_v16, %v1141_v54  ;;  %v1154_v45 = vmax.f32 %v1146_v5, %v1142_v57  ;;  %v1155_v53 = vmax.f32 %v1147_v11, %v1143_v48  ;;  %1198 = dma.vmem_to_hbm [thread:$0]  (%p89_p0), %s1191_s12, 256, %s1193_s10, [#allocation5], %s1603_s23, %s1603_s23, %s1604_s24  }
  0xbb   : > { %v1156_v8 = vmin.f32 %v1148_v0, %v1152_v14  }
  0xbc   : > { %v1157_v18 = vmin.f32 %v1149_v21, %v1153_v15   ;;  %v1158_v6 = vmin.f32 %v1150_v59, %v1154_v45   ;;  %v1159_v5 = vmin.f32 %v1151_v44, %v1155_v53  }
  0xbd   : > { %v1160_v12 = vsub.f32 %v1132_v56, %v1156_v8  ;;  %v1172_v20 = vmul.f32 0.1, %v1156_v8 }
  0xbe   : > { %v1161_v22 = vsub.f32 %v1133_v7, %v1157_v18  ;;  %v1162_v17 = vsub.f32 %v1134_v37, %v1158_v6  ;;  %v1163_v51 = vsub.f32 %v1135_v35, %v1159_v5  ;;  %v1173_v13 = vmul.f32 0.1, %v1157_v18 }
  0xbf   : > { %v1164_v19 = vmul.f32 0.1, %v1160_v12  ;;  %v1174_v49 = vmul.f32 0.1, %v1158_v6  ;;  %v1175_v32 = vmul.f32 0.1, %v1159_v5  ;;  %v2534_v7 = vmov %v1157_v18 }
  0xc0   : > { %v1165_v47 = vmul.f32 0.1, %v1161_v22  ;;  %v1166_v50 = vmul.f32 0.1, %v1162_v17  ;;  %v1167_v30 = vmul.f32 0.1, %v1163_v51 }
  0xc1   : > { %v1168_v4 = vadd.f32 %v1572_v4, %v1164_v19  }
  0xc2   : > { %v1169_v3 = vadd.f32 %v1568_v3, %v1165_v47   ;;  %v1170_v2 = vadd.f32 %v1564_v2, %v1166_v50   ;;  %v1171_v1 = vadd.f32 %v1560_v1, %v1167_v30  }
  0xc3   : > { %v1176_v23 = vsub.f32 %v1172_v20, %v1168_v4 }
  0xc4   : > { %v1177_v61 = vsub.f32 %v1173_v13, %v1169_v3  ;;  %v1178_v42 = vsub.f32 %v1174_v49, %v1170_v2  ;;  %v1179_v26 = vsub.f32 %v1175_v32, %v1171_v1  ;;  %91 = sbr.rel (!%p89_p0) target bundleno = 26 (0x1a), region = 106 }
  0xc5   : > { %1180 = vst [vmem:[#allocation2 + $0x10] sm:$0xff] %v1176_v23 }
  0xc6   : > { %1181 = vst [vmem:[#allocation2 + $0x18] sm:$0xff] %v1177_v61 }
  0xc7   : > { %1182 = vst [vmem:[#allocation2 + $0x20] sm:$0xff] %v1178_v42 }
  0xc8   : > { %1183 = vst [vmem:[#allocation2 + $0x28] sm:$0xff] %v1179_v26 }
  0xc9   :  { %1556 = dma.done.wait [#allocation5], 256  }
  0xca   :  { %1557 = vsyncadd [#allocation5], 4294967040 }
  0xcb   :  { %1203 = vsyncpa [#allocation4], 1 }
  0xcc   :  { %1204 = vsyncpa [#allocation7], 1 }
  0xcd   :  { %1205 = vsyncpa [#allocation10], 1 }
  0xce   :  { %1206 = vsyncpa [#allocation5], 1 }

</bundles_post_ra>
